<compile_context>
chip_gen: v6e
topology: v6e:2x2x1
jax: 0.10.0
libtpu: 0.0.40
codegen_flags: <defaults>
</compile_context>

<pallas_src>
import numpy as np
import jax
import jax.numpy as jnp
from jax import lax
from jax.experimental import pallas as pl
from jax.experimental.pallas import tpu as pltpu

P_DROP = 0.1
# numpy scalars -> inlined as jaxpr literals (jnp scalars would be rejected consts)
KEEP_SCALE = np.float32(1.0 / (1.0 - P_DROP))
# drop iff hashed bits < threshold; P(bits < t) = t / 2^32 = P_DROP
DROP_THRESHOLD = np.uint32(int(round(P_DROP * (1 << 32))))
GOLDEN = np.uint32(0x9E3779B9)   # seed spreading
MIX_MUL = np.uint32(0x9E3779B1)  # odd golden-ratio multiplier: best top-bit equidistribution


def _keep_mask(row_start, block_rows, hidden, seed_u32):
    """Grid-invariant keep mask for a (block_rows, hidden) tile starting at row_start.

    Pure jnp so it lowers on TPU, interpret mode and host alike.  One 32-bit
    multiply per element (multiplicative / Weyl hash) -- dropout does not need
    cryptographic-quality bits, only an unbiased keep rate.
    """
    col_bits = max(1, (hidden - 1).bit_length())
    row = lax.broadcasted_iota(jnp.int32, (block_rows, hidden), 0) + row_start
    col = lax.broadcasted_iota(jnp.int32, (block_rows, hidden), 1)
    # Unique element id via shift|or (hidden <= 2^col_bits, rows << col_bits < 2^31).
    lin = ((row << col_bits) | col).astype(jnp.uint32)
    x = lin + seed_u32 * GOLDEN
    x = x ^ (x >> 16)          # fold seeded high bits into the low bits
    x = x * MIX_MUL            # single multiply spreads to the high bits
    return x >= DROP_THRESHOLD


def dropout_add_kernel(seed_ref, x95_ref, x66_ref, out_ref):
    block_rows, hidden = x95_ref.shape
    row_start = pl.program_id(0) * block_rows
    keep = _keep_mask(row_start, block_rows, hidden, seed_ref[0].astype(jnp.uint32))
    # Fused: compare -> single select -> scale -> add.
    out_ref[...] = x66_ref[...] + jnp.where(keep, x95_ref[...] * KEEP_SCALE,
                                            jnp.float32(0.0))


def dropout_add_kernel_hw_prng(seed_ref, x95_ref, x66_ref, out_ref):
    # Hardware PRNG path (compiled TPU only): offloads mask generation off the
    # VALU slots.  Mask depends on the grid/block choice (documented tradeoff).
    pltpu.prng_seed(seed_ref[0] + pl.program_id(0))
    bits = pltpu.bitcast(pltpu.prng_random_bits(x95_ref.shape), jnp.uint32)
    keep = bits >= DROP_THRESHOLD
    out_ref[...] = x66_ref[...] + jnp.where(keep, x95_ref[...] * KEEP_SCALE,
                                            jnp.float32(0.0))


def dropout_add(x95, x66, seed=0, *, block_rows=192, use_hw_prng=False):
    assert x95.shape == x66.shape and x95.dtype == x66.dtype
    B, S, H = x95.shape
    rows = B * S
    x95_2d = x95.reshape(rows, H)
    x66_2d = x66.reshape(rows, H)

    grid = (pl.cdiv(rows, block_rows),)
    seed_arr = jnp.array([seed], dtype=jnp.int32)
    kernel = dropout_add_kernel_hw_prng if use_hw_prng else dropout_add_kernel

    out_2d = pl.pallas_call(
        kernel,
        out_shape=jax.ShapeDtypeStruct((rows, H), x95.dtype),
        grid_spec=pltpu.PrefetchScalarGridSpec(
            num_scalar_prefetch=1,
            grid=grid,
            in_specs=[
                pl.BlockSpec((block_rows, H), lambda i, seed: (i, 0)),
                pl.BlockSpec((block_rows, H), lambda i, seed: (i, 0)),
            ],
            out_specs=pl.BlockSpec((block_rows, H), lambda i, seed: (i, 0)),
        ),
        # operand order: (seed, x95, x66) -> alias x66's buffer to the output.
        input_output_aliases={2: 0},
        compiler_params=pltpu.CompilerParams(
            dimension_semantics=("parallel",),
        ),
    )(seed_arr, x95_2d, x66_2d)

    return out_2d.reshape(B, S, H)


if __name__ == "__main__":
    key = jax.random.PRNGKey(0)
    k1, k2 = jax.random.split(key)
    # Shapes implied by the module's forward: (1, 384, 768)
    x95 = jax.random.normal(k1, (1, 384, 768), dtype=jnp.float32)
    x66 = jax.random.normal(k2, (1, 384, 768), dtype=jnp.float32)

    out = dropout_add(x95, x66, seed=0)
    jax.block_until_ready(out)

    # Reference: same grid-invariant mask computed on the host in pure jnp.
    rows, H = 384, 768
    keep_ref = _keep_mask(0, rows, H, jnp.uint32(0))
    ref = (x66.reshape(rows, H)
           + jnp.where(keep_ref, x95.reshape(rows, H) * KEEP_SCALE,
                       jnp.float32(0.0))).reshape(1, 384, 768)
    assert jnp.allclose(out, ref, atol=1e-6, rtol=1e-6)

    # Keep-rate should be roughly 1 - p.
    keep_rate = float(jnp.mean(keep_ref.astype(jnp.float32)))
    assert 0.85 < keep_rate < 0.95, keep_rate

    # Every output element is either the residual (dropped) or residual + scaled x95.
    kept_val = x66 + x95 / (1.0 - P_DROP)
    is_drop = jnp.isclose(out, x66, atol=1e-5)
    is_keep = jnp.isclose(out, kept_val, atol=1e-5)
    assert bool(jnp.all(is_drop | is_keep))

    print("KERNEL_OK")
</pallas_src>

<mosaic_0001>
module attributes {stable_mosaic.version = 11 : i64} {
  func.func @dropout_add_kernel(%arg0: i32, %arg1: memref<1xi32, #tpu.memory_space<smem>>, %arg2: memref<192x768xf32, #tpu.memory_space<vmem>>, %arg3: memref<192x768xf32, #tpu.memory_space<vmem>>, %arg4: memref<192x768xf32, #tpu.memory_space<vmem>>) attributes {dimension_semantics = [#tpu.dimension_semantics<parallel>], iteration_bounds = array<i64: 2>, scalar_prefetch = 1 : i64, scratch_operands = 0 : i64, tpu.core_type = #tpu.core_type<tc>, window_params = [{transform_indices = @transform_0, window_bounds = array<i64: 192, 768>}, {transform_indices = @transform_1, window_bounds = array<i64: 192, 768>}, {transform_indices = @transform_2, window_bounds = array<i64: 192, 768>}]} {
    %c192_i32 = arith.constant 192 : i32
    %0 = arith.muli %arg0, %c192_i32 : i32
    %c0 = arith.constant 0 : index
    %1 = memref.load %arg1[%c0] : memref<1xi32, #tpu.memory_space<smem>>
    %2 = tpu.iota {dimensions = array<i32: 0>} : vector<192x768xi32>
    %3 = vector.broadcast %0 : i32 to vector<192x768xi32>
    %4 = arith.addi %2, %3 : vector<192x768xi32>
    %5 = tpu.iota {dimensions = array<i32: 1>} : vector<192x768xi32>
    %c10_i32 = arith.constant 10 : i32
    %6 = vector.broadcast %c10_i32 : i32 to vector<192x768xi32>
    %7 = arith.shli %4, %6 : vector<192x768xi32>
    %8 = arith.ori %7, %5 : vector<192x768xi32>
    %c-1640531527_i32 = arith.constant -1640531527 : i32
    %9 = arith.muli %1, %c-1640531527_i32 : i32
    %10 = vector.broadcast %9 : i32 to vector<192x768xi32>
    %11 = arith.addi %8, %10 : vector<192x768xi32>
    %c16_i32 = arith.constant 16 : i32
    %12 = vector.broadcast %c16_i32 : i32 to vector<192x768xi32>
    %13 = arith.shrui %11, %12 : vector<192x768xi32>
    %14 = arith.xori %11, %13 : vector<192x768xi32>
    %c-1640531535_i32 = arith.constant -1640531535 : i32
    %15 = vector.broadcast %c-1640531535_i32 : i32 to vector<192x768xi32>
    %16 = arith.muli %14, %15 : vector<192x768xi32>
    %c429496730_i32 = arith.constant 429496730 : i32
    %17 = vector.broadcast %c429496730_i32 : i32 to vector<192x768xi32>
    %18 = arith.cmpi uge, %16, %17 : vector<192x768xi32>
    %c0_0 = arith.constant 0 : index
    %c0_1 = arith.constant 0 : index
    %19 = vector.load %arg3[%c0_0, %c0_1] : memref<192x768xf32, #tpu.memory_space<vmem>>, vector<192x768xf32>
    %c0_2 = arith.constant 0 : index
    %c0_3 = arith.constant 0 : index
    %20 = vector.load %arg2[%c0_2, %c0_3] : memref<192x768xf32, #tpu.memory_space<vmem>>, vector<192x768xf32>
    %cst = arith.constant 1.11111116 : f32
    %21 = vector.broadcast %cst : f32 to vector<192x768xf32>
    %22 = arith.mulf %20, %21 : vector<192x768xf32>
    %cst_4 = arith.constant 0.000000e+00 : f32
    %23 = vector.broadcast %cst_4 : f32 to vector<192x768xf32>
    %24 = arith.select %18, %22, %23 : vector<192x768xi1>, vector<192x768xf32>
    %25 = arith.addf %19, %24 : vector<192x768xf32>
    %c0_5 = arith.constant 0 : index
    %c0_6 = arith.constant 0 : index
    %26 = vector.load %arg4[%c0_5, %c0_6] : memref<192x768xf32, #tpu.memory_space<vmem>>, vector<192x768xf32>
    tpu.vector_store %arg4[%c0_5, %c0_6], %25 {strides = array<i32>} : memref<192x768xf32, #tpu.memory_space<vmem>>, vector<192x768xf32>,
    return
  }
  func.func @transform_0(%arg0: i32, %arg1: memref<1xi32, #tpu.memory_space<smem>>) -> (i32, i32) {
    %c0_i32 = arith.constant 0 : i32
    %c0_i32_0 = arith.constant 0 : i32
    return %arg0, %c0_i32 : i32, i32
  }
  func.func @transform_1(%arg0: i32, %arg1: memref<1xi32, #tpu.memory_space<smem>>) -> (i32, i32) {
    %c0_i32 = arith.constant 0 : i32
    %c0_i32_0 = arith.constant 0 : i32
    return %arg0, %c0_i32 : i32, i32
  }
  func.func @transform_2(%arg0: i32, %arg1: memref<1xi32, #tpu.memory_space<smem>>) -> (i32, i32) {
    %c0_i32 = arith.constant 0 : i32
    %c0_i32_0 = arith.constant 0 : i32
    return %arg0, %c0_i32 : i32, i32
  }
}

</mosaic_0001>

<bundles_post_ra>
// kernel: tpu_custom_call.1
= control target key start
LH: loop header
LB: loop body
LE: loop exit
PB: predicated region body
PF: predicated region fallthrough
CT: control target
= control target key end

     0   :  { %s3479_s0 = inlined_call_operand.<no memory space> [shape: s32[1], index: 0, kind: input, shape index: {}]   ;;  %s3480_s1 = inlined_call_operand.vmem [shape: f32[384,768], index: 1, kind: input, shape index: {}]   ;;  %s3481_s2 = inlined_call_operand.hbm [shape: f32[384,768], index: 2, kind: input, shape index: {}, may-alias: {2,3}]   ;;  %s3482_s3 = inlined_call_operand.hbm [shape: f32[384,768], index: 3, kind: output, shape index: {}, may-alias: {2,3}]  }
   0x1   :  { %8 = sst [smem:[#allocation3]] %s3479_s0 }
   0x2   :  { %9 = vsyncpa [#allocation5], 0 }
   0x3   :  { %11 = vsyncpa [#allocation5 + $0x1], 0 }
   0x4   :  { %12 = vsyncpa [#allocation6], 0 }
   0x5   :  { %14 = vsyncpa [#allocation6 + $0x1], 0  ;;  %s2294_s14 = smov 0   ;;  %s2296_s15 = smov 0  }
   0x6   :  { %s2298_s16 = smov 0   ;;  %s2300_s17 = smov 0  }
   0x7 LB: > { %s2315_s0 = sadd.s32 4294967295, %s2263_s17   ;;  %s2105_s18 = sadd.s32 4294967294, %s2263_s17   ;;  %s2263_s17 = sphi %s2300_s17, %s3497_s17   ;;  %s2259_s16 = sphi %s2298_s16, %s3496_s16   ;;  %s2255_s15 = sphi %s2296_s15, %s3495_s15   ;;  %s2251_s14 = sphi %s2294_s14, %s3494_s14  }
   0x8   : > { %s2319_s19 = sadd.s32 1, %s2263_s17   ;;  %s53_s20 = sadd.s32 1, %s2259_s16 }
   0x9   : > { %s50_s21 = ssub.s32 %s2263_s17, %s2319_s19  ;;  %p60_p0 = scmp.ne.s32.totalorder %s2259_s16, %s2255_s15 }
   0xa   : > { %p51_p1 = scmp.eq.s32.totalorder %s50_s21, 0  ;;  %p61_p2 = scmp.eq.s32.totalorder %s2263_s17, 0 }
   0xb   : > { %p66_p3 = scmp.ne.s32.totalorder %s2255_s15, %s2251_s14  ;;  %p67_p4 = scmp.eq.s32.totalorder %s2315_s0, 0 }
   0xc   : > { %s2331_s22 = scalar_select %p51_p1, %s2259_s16, %s53_s20  }
   0xd   : > { %p62_p5 = por %p61_p2, %p60_p0  ;;  %p2333_p6 = por %p67_p4, %p66_p3 }
   0xe   : > { %p90_p7 = scmp.eq.s32.totalorder %s2315_s0, 1  ;;  %p96_p8 = scmp.eq.s32.totalorder %s2105_s18, 1 }
   0xf   : > { %s3485_s23 = scalar_select %p2333_p6, 1, 0 }
  0x10   : > { %p2131_p10 = scmp.lt.s32.totalorder %s2263_s17, 2  ;;  %p2340_p11 = por %p90_p7, %p60_p0 }
  0x11   : > { %p2344_p12 = por %p96_p8, %p66_p3  ;;  %s126_s26 = sand.u32 1, %s2259_s16  }
  0x12   : > { %s3486_s24 = scalar_select %p2340_p11, 1, 0 }
  0x13   : > { %s3487_s25 = scalar_select %p2344_p12, 1, 0 }
  0x14   : > { %s2114_s27 = smul.u32 1152, %s126_s26  ;;  %p2350_p13 = pnand %p2131_p10, %p62_p5 }
  0x15   : > { %s2132_s28 = smul.u32 18432, %s2263_s17  ;;  %s2362_s8 = scalar_lea.sflag [#allocation5], %s126_s26 }
  0x16   : > { %s130_s6 = scalar_lea.vmem [#allocation4], %s2114_s27  ;;  %p2173_p2 = pneg %p2350_p13 }
  0x17   : > { %s2357_s5 = scalar_lea.hbm %s3481_s2, %s2132_s28  ;;  %s138_s7 = sshll.u32 %s130_s6, 4  ;;  %s2359_s7 = int_to_ptr.vmem [resolvable:$true] %s138_s7 }
  0x18   : > { %s2171_s9 = scalar_lea.hbm %s2357_s5, 18432  ;;  %s2176_s12 = scalar_lea.hbm %s3481_s2, 36864 }
  0x19   : > { %p2172_p1 = scmp.ne.s32.totalorder %s2357_s5, %s2171_s9  ;;  %p2177_p5 = scmp.lt.s32.totalorder %s2357_s5, %s3481_s2 }
  0x1a   : > { %p2178_p7 = scmp.lt.s32.totalorder %s2176_s12, %s2171_s9 }
  0x1b   : > { %p2174_p3 = pnand %p2173_p2, %p2172_p1 }
  0x1c   : > { %p2179_p8 = por %p2178_p7, %p2177_p5 }
  0x1d   : > { %p2175_p4 = pneg %p2174_p3 }
  0x1f   : > { %p2180_p10 = pnand %p2179_p8, %p2175_p4 }
  0x21   : > { %2183 = shalt.err (!%p2180_p10)
}
  0x22   : > { %s2184_s20 = scalar_lea.vmem %s2359_s7, 18432  ;;  %s2265_s21 = smov [#allocation4]  }
  0x23   : > { %p2185_p9 = scmp.ne.s32.totalorder %s2359_s7, %s2184_s20  ;;  %s2189_s26 = sshll.u32 %s2265_s21, 4  ;;  %s2190_s26 = int_to_ptr.vmem [resolvable:$false] %s2189_s26 }
  0x24   : > { %s2191_s27 = scalar_lea.vmem %s2190_s26, 36864  ;;  %p2192_p3 = scmp.lt.s32.totalorder %s2359_s7, %s2190_s26 }
  0x25   : > { %p2187_p0 = pnand %p2185_p9, %p2173_p2  ;;  %p2193_p12 = scmp.lt.s32.totalorder %s2191_s27, %s2184_s20 }
  0x27   : > { %p2188_p1 = pneg %p2187_p0  ;;  %p2194_p11 = por %p2193_p12, %p2192_p3 }
  0x29   : > { %p2195_p6 = pnand %p2194_p11, %p2188_p1 }
  0x2b   : > { %2198 = shalt.err (!%p2195_p6)
}
  0x2c   : > { %s2266_s28 = smov 768   ;;  %s2267_s30 = smov 48  }
  0x2d   : > { %2126 = dma.hbm_to_vmem [thread:$0]  (!%p2350_p13), %s2357_s5, 18432, %s2359_s7, %s2362_s8, %s2266_s28, %s2266_s28, %s2267_s30  }
  0x2e   : > { %p146_p9 = scmp.lt.s32.totalorder %s2263_s17, 3  ;;  %p3489_p0 = scmp.ge.s32.totalorder %s2263_s17, 1 }
  0x30   : > { %p147_p2 = pnand %p3489_p0, %p146_p9 }
  0x31   : > { %s2387_s4 = sand.u32 (!%p147_p2), 1, %s2255_s15   ;;  %p3490_p6 = scmp.ne.s32.totalorder (!%p147_p2), %s3485_s23, 0 }
  0x32   : > { %150 = sbr.rel (%p147_p2) target bundleno = 426 (0x1aa), region = 28  ;;  %s153_s9 = scalar_lea.sflag (!%p147_p2), [#allocation5], %s2387_s4 }
  0x33   : > { %s2116_s6 = smul.u32 (!%p147_p2), 1152, %s2387_s4 }
  0x35   : > { %s2393_s10 = scalar_lea.vmem (!%p147_p2), [#allocation4], %s2116_s6 }
  0x37   : > { %2242 = dma.done.wait (%p3490_p6), %s153_s9, 18432  }
  0x38   : > { %2244 = vsyncadd (%p3490_p6), %s153_s9, 4294948864  ;;  %s183_s29 = smul.u32 24, %s2315_s0  ;;  %v194_v0 = vlaneseq  ;;  %s193_s7 = sld [smem:[#allocation3]]  ;;  %v1141_v54 = vld [vmem:[%s2393_s10] sm:$0xff]  ;;  %v1142_v61 = vld [vmem:[%s2393_s10 + $0x8] sm:$0xff] }
  0x39   : > { %s192_s5 = smul.u32 192, %s2315_s0  ;;  %v1143_v62 = vld [vmem:[%s2393_s10 + $0x10] sm:$0xff]  ;;  %s2490_s18 = scalar_lea.vmem [#allocation7], %s2116_s6 }
  0x3a   : > { %p184_p11 = scmp.lt.s32.totalorder %s183_s29, 47  ;;  %v2401_v1 = vshrl.u32 %v194_v0, 7  ;;  %v2403_v2 = vand.u32 127, %v194_v0  ;;  %s2133_s20 = smul.u32 18432, %s2315_s0 }
  0x3b   : > { %v2405_v3 = vstv %s192_s5  ;;  %s2020_s21 = sshll.u32 %s2490_s18, 4  ;;  %s2006_s0 = scalar_lea.sflag [#allocation6], %s2387_s4  ;;  %s3435_s21 = int_to_ptr.vmem [resolvable:$true] %s2020_s21 }
  0x3c   : > { %s3499_s29 = smov (!%p184_p11, %s183_s29), 47  ;;  %v220_v4 = vadd.s32 %v2405_v3, %v2401_v1  ;;  %v2410_v5 = vadd.s32 128, %v2403_v2  ;;  %v2413_v6 = vadd.s32 256, %v2403_v2  ;;  %v2416_v7 = vadd.s32 384, %v2403_v2  ;;  %s3432_s28 = scalar_lea.hbm %s3482_s3, %s2133_s20 }
  0x3d   : > { %v2419_v8 = vadd.s32 512, %v2403_v2  ;;  %v2422_v9 = vadd.s32 640, %v2403_v2  ;;  %v196_v10 = vadd.s32 8, %v2401_v1  ;;  %v197_v11 = vadd.s32 16, %v2401_v1  ;;  %s2117_s23 = smul.u32 48, %s3499_s29  ;;  %s2199_s30 = scalar_lea.vmem %s3435_s21, 18432 }
  0x3e   : > { %v251_v12 = vshll.u32 %v220_v4, 10  ;;  %v2427_v13 = vadd.s32 24, %v2401_v1  ;;  %v2430_v14 = vadd.s32 32, %v2401_v1  ;;  %s419_s8 = smul.u32 2654435769, %s193_s7  ;;  %v2437_v17 = vadd.s32 40, %v2401_v1  ;;  %p2200_p12 = scmp.ne.s32.totalorder %s3435_s21, %s2199_s30 }
  0x3f   : > { %v221_v15 = vadd.s32 %v2405_v3, %v196_v10  ;;  %v2434_v16 = vadd.s32 %v2405_v3, %v197_v11  ;;  %v2440_v18 = vadd.s32 48, %v2401_v1  ;;  %s2445_s13 = scalar_lea.vmem %s3480_s1, %s2117_s23  ;;  %v1144_v11 = vld [vmem:[%s2393_s10 + $0x18] sm:$0xff]  ;;  %p3491_p13 = scmp.ne.s32.totalorder %s3486_s24, 0 }
  0x40   : > { %v275_v19 = vor.u32 %v251_v12, %v2403_v2  ;;  %v276_v20 = vor.u32 %v251_v12, %v2410_v5  ;;  %v277_v21 = vor.u32 %v251_v12, %v2413_v6  ;;  %v278_v22 = vor.u32 %v251_v12, %v2416_v7  ;;  %v1285_v24 = vld [vmem:[%s2445_s13] sm:$0xff]  ;;  %v1286_v25 = vld [vmem:[%s2445_s13 + $0x8] sm:$0xff]  ;;  %v1287_v26 = vld [vmem:[%s2445_s13 + $0x10] sm:$0xff]  ;;  %s2268_s6 = smov [#allocation7]  }
  0x41   : > { %v2451_v23 = vstv %s419_s8  ;;  %v279_v27 = vor.u32 %v251_v12, %v2419_v8  ;;  %v280_v28 = vor.u32 %v251_v12, %v2422_v9  ;;  %v2458_v29 = vshll.u32 %v221_v15, 10  ;;  %v1288_v34 = vld [vmem:[%s2445_s13 + $0x18] sm:$0xff]  ;;  %v1289_v35 = vld [vmem:[%s2445_s13 + $0x20] sm:$0xff]  ;;  %v1290_v40 = vld [vmem:[%s2445_s13 + $0x28] sm:$0xff]  ;;  %p2201_p4 = pnand %p2200_p12, %p3491_p13  ;;  %s2203_s9 = sshll.u32 %s2268_s6, 4  ;;  %s2204_s9 = int_to_ptr.vmem [resolvable:$false] %s2203_s9 }
  0x42   : > { %v421_v30 = vadd.s32 %v2451_v23, %v275_v19  ;;  %v1429_v31 = vmul.f32 1.1111112, %v1285_v24  ;;  %v422_v32 = vadd.s32 %v2451_v23, %v276_v20  ;;  %v1430_v33 = vmul.f32 1.1111112, %v1286_v25  ;;  %v1291_v45 = vld [vmem:[%s2445_s13 + $0x30] sm:$0xff]  ;;  %v1292_v19 = vld [vmem:[%s2445_s13 + $0x38] sm:$0xff]  ;;  %p2206_p7 = scmp.lt.s32.totalorder %s3435_s21, %s2204_s9 }
  0x43   : > { %v423_v36 = vadd.s32 %v2451_v23, %v277_v21  ;;  %v1431_v37 = vmul.f32 1.1111112, %v1287_v26  ;;  %v424_v38 = vadd.s32 %v2451_v23, %v278_v22  ;;  %v1432_v39 = vmul.f32 1.1111112, %v1288_v34  ;;  %p2202_p5 = pneg %p2201_p4 }
  0x44   : > { %v565_v41 = vshrl.u32 %v421_v30, 16  ;;  %v566_v42 = vshrl.u32 %v422_v32, 16  ;;  %v425_v43 = vadd.s32 %v2451_v23, %v279_v27  ;;  %v1433_v44 = vmul.f32 1.1111112, %v1289_v35 }
  0x45   : > { %v567_v46 = vshrl.u32 %v423_v36, 16  ;;  %v568_v47 = vshrl.u32 %v424_v38, 16  ;;  %v426_v48 = vadd.s32 %v2451_v23, %v280_v28  ;;  %v2470_v49 = vmul.f32 1.1111112, %v1290_v40  ;;  %v1294_v40 = vld [vmem:[%s2445_s13 + $0x48] sm:$0xff] }
  0x46   : > { %v709_v50 = vxor.u32 %v565_v41, %v421_v30  ;;  %v710_v51 = vxor.u32 %v566_v42, %v422_v32  ;;  %v569_v52 = vshrl.u32 %v425_v43, 16  ;;  %v281_v53 = vor.u32 %v2458_v29, %v2403_v2  ;;  %v1145_v30 = vld [vmem:[%s2393_s10 + $0x20] sm:$0xff] }
  0x47   : > { %v711_v55 = vxor.u32 %v567_v46, %v423_v36  ;;  %v712_v56 = vxor.u32 %v568_v47, %v424_v38  ;;  %v570_v57 = vshrl.u32 %v426_v48, 16  ;;  %v2475_v58 = vmul.f32 1.1111112, %v1291_v45  ;;  %v1293_v32 = vld [vmem:[%s2445_s13 + $0x40] sm:$0xff]  ;;  %v1295_v45 = vld [vmem:[%s2445_s13 + $0x50] sm:$0xff] }
  0x48   : > { %v853_v59 = vmul.u32 2654435761, %v709_v50  ;;  %v854_v60 = vmul.u32 2654435761, %v710_v51  ;;  %v713_v63 = vxor.u32 %v569_v52, %v425_v43  ;;  %v427_v0 = vadd.s32 %v2451_v23, %v281_v53  ;;  %v1296_v50 = vld [vmem:[%s2445_s13 + $0x58] sm:$0xff] }
  0x49   : > { %v855_v4 = vmul.u32 2654435761, %v711_v55  ;;  %v856_v10 = vmul.u32 2654435761, %v712_v56  ;;  %v714_v12 = vxor.u32 %v570_v57, %v426_v48  ;;  %v282_v15 = vor.u32 %v2458_v29, %v2410_v5 }
  0x4a   : > { %vm997_vm0 = vcmp.ge.u32.totalorder %v853_v59, 429496730  ;;  %vm998_vm1 = vcmp.ge.u32.totalorder %v854_v60, 429496730  ;;  %v857_v20 = vmul.u32 2654435761, %v713_v63  ;;  %v283_v21 = vor.u32 %v2458_v29, %v2413_v6 }
  0x4b   : > { %v1573_v22 = vsel %vm997_vm0, %v1429_v31, 0.0  ;;  %v1574_v24 = vsel %vm998_vm1, %v1430_v33, 0.0  ;;  %vm999_vm2 = vcmp.ge.u32.totalorder %v855_v4, 429496730  ;;  %vm1000_vm3 = vcmp.ge.u32.totalorder %v856_v10, 429496730 }
  0x4c   : > { %v1717_v25 = vadd.f32 %v1573_v22, %v1141_v54  ;;  %v1718_v26 = vadd.f32 %v1574_v24, %v1142_v61  ;;  %v1575_v27 = vsel %vm999_vm2, %v1431_v37, 0.0  ;;  %v1576_v28 = vsel %vm1000_vm3, %v1432_v39, 0.0  ;;  %v1146_v33 = vld [vmem:[%s2393_s10 + $0x28] sm:$0xff] }
  0x4d   : > { %v1719_v34 = vadd.f32 %v1575_v27, %v1143_v62  ;;  %v1720_v35 = vadd.f32 %v1576_v28, %v1144_v11  ;;  %vm1001_vm4 = vcmp.ge.u32.totalorder %v857_v20, 429496730  ;;  %v858_v36 = vmul.u32 2654435761, %v714_v12  ;;  %v1148_v12 = vld [vmem:[%s2393_s10 + $0x38] sm:$0xff]  ;;  %v1298_v27 = vld [vmem:[%s2445_s13 + $0x68] sm:$0xff] }
  0x4e   : > { %1861 = vst [vmem:[%s2490_s18] sm:$0xff] %v1717_v25  ;;  %1862 = vst [vmem:[%s2490_s18 + $0x8] sm:$0xff] %v1718_v26  ;;  %v1577_v31 = vsel %vm1001_vm4, %v1433_v44, 0.0  ;;  %v571_v37 = vshrl.u32 %v427_v0, 16  ;;  %v428_v38 = vadd.s32 %v2451_v23, %v282_v15  ;;  %v1436_v39 = vmul.f32 1.1111112, %v1292_v19 }
  0x4f   : > { %1863 = vst [vmem:[%s2490_s18 + $0x10] sm:$0xff] %v1719_v34  ;;  %1864 = vst [vmem:[%s2490_s18 + $0x18] sm:$0xff] %v1720_v35  ;;  %v1721_v41 = vadd.f32 %v1577_v31, %v1145_v30  ;;  %vm1002_vm5 = vcmp.ge.u32.totalorder %v858_v36, 429496730  ;;  %v429_v42 = vadd.s32 %v2451_v23, %v283_v21  ;;  %v1437_v43 = vmul.f32 1.1111112, %v1293_v32 }
  0x50   : > { %v1578_v44 = vsel %vm1002_vm5, %v2470_v49, 0.0  ;;  %v715_v46 = vxor.u32 %v571_v37, %v427_v0  ;;  %v572_v47 = vshrl.u32 %v428_v38, 16  ;;  %v284_v48 = vor.u32 %v2458_v29, %v2416_v7  ;;  %v1147_v49 = vld [vmem:[%s2393_s10 + $0x30] sm:$0xff]  ;;  %v1150_v36 = vld [vmem:[%s2393_s10 + $0x48] sm:$0xff] }
  0x51   : > { %1865 = vst [vmem:[%s2490_s18 + $0x20] sm:$0xff] %v1721_v41  ;;  %v1722_v51 = vadd.f32 %v1578_v44, %v1146_v33  ;;  %v573_v52 = vshrl.u32 %v429_v42, 16  ;;  %v1438_v53 = vmul.f32 1.1111112, %v1294_v40  ;;  %v285_v54 = vor.u32 %v2458_v29, %v2419_v8  ;;  %v1151_v33 = vld [vmem:[%s2393_s10 + $0x50] sm:$0xff] }
  0x52   : > { %v859_v55 = vmul.u32 2654435761, %v715_v46  ;;  %v716_v56 = vxor.u32 %v572_v47, %v428_v38  ;;  %v430_v57 = vadd.s32 %v2451_v23, %v284_v48  ;;  %v1439_v59 = vmul.f32 1.1111112, %v1295_v45  ;;  %v1152_v48 = vld [vmem:[%s2393_s10 + $0x58] sm:$0xff] }
  0x53   : > { %1866 = vst [vmem:[%s2490_s18 + $0x28] sm:$0xff] %v1722_v51  ;;  %v717_v60 = vxor.u32 %v573_v52, %v429_v42  ;;  %v431_v61 = vadd.s32 %v2451_v23, %v285_v54  ;;  %v286_v62 = vor.u32 %v2458_v29, %v2422_v9  ;;  %v1440_v63 = vmul.f32 1.1111112, %v1296_v50  ;;  %v1149_v29 = vld [vmem:[%s2393_s10 + $0x40] sm:$0xff]  ;;  %v1299_v42 = vld [vmem:[%s2445_s13 + $0x70] sm:$0xff]  ;;  %v1300_v52 = vld [vmem:[%s2445_s13 + $0x78] sm:$0xff] }
  0x54   : > { %vm1003_vm6 = vcmp.ge.u32.totalorder %v859_v55, 429496730  ;;  %v860_v0 = vmul.u32 2654435761, %v716_v56  ;;  %v574_v4 = vshrl.u32 %v430_v57, 16  ;;  %v2515_v10 = vshll.u32 %v2434_v16, 10 }
  0x55   : > { %v1579_v11 = vsel %vm1003_vm6, %v2475_v58, 0.0  ;;  %v861_v15 = vmul.u32 2654435761, %v717_v60  ;;  %v575_v19 = vshrl.u32 %v431_v61, 16  ;;  %v432_v20 = vadd.s32 %v2451_v23, %v286_v62  ;;  %v1297_v16 = vld [vmem:[%s2445_s13 + $0x60] sm:$0xff] }
  0x56   : > { %v1723_v21 = vadd.f32 %v1579_v11, %v1147_v49  ;;  %vm1004_vm7 = vcmp.ge.u32.totalorder %v860_v0, 429496730  ;;  %v718_v22 = vxor.u32 %v574_v4, %v430_v57  ;;  %v287_v24 = vor.u32 %v2515_v10, %v2403_v2  ;;  %v1301_v56 = vld [vmem:[%s2445_s13 + $0x80] sm:$0xff] }
  0x57   : > { %v1580_v25 = vsel %vm1004_vm7, %v1436_v39, 0.0  ;;  %vm1005_vm8 = vcmp.ge.u32.totalorder %v861_v15, 429496730  ;;  %v719_v58 = vxor.u32 %v575_v19, %v431_v61  ;;  %v576_v26 = vshrl.u32 %v432_v20, 16  ;;  %v1153_v62 = vld [vmem:[%s2393_s10 + $0x60] sm:$0xff] }
  0x58   : > { %1867 = vst [vmem:[%s2490_s18 + $0x30] sm:$0xff] %v1723_v21  ;;  %v1724_v28 = vadd.f32 %v1580_v25, %v1148_v12  ;;  %v1581_v30 = vsel %vm1005_vm8, %v1437_v43, 0.0  ;;  %v862_v32 = vmul.u32 2654435761, %v718_v22  ;;  %v433_v34 = vadd.s32 %v2451_v23, %v287_v24  ;;  %v1302_v12 = vld [vmem:[%s2445_s13 + $0x88] sm:$0xff]  ;;  %v1303_v24 = vld [vmem:[%s2445_s13 + $0x90] sm:$0xff] }
  0x59   : > { %v1725_v35 = vadd.f32 %v1581_v30, %v1149_v29  ;;  %v863_v31 = vmul.u32 2654435761, %v719_v58  ;;  %v720_v37 = vxor.u32 %v576_v26, %v432_v20  ;;  %v1441_v38 = vmul.f32 1.1111112, %v1297_v16  ;;  %v1304_v16 = vld [vmem:[%s2445_s13 + $0x98] sm:$0xff] }
  0x5a   : > { %1868 = vst [vmem:[%s2490_s18 + $0x38] sm:$0xff] %v1724_v28  ;;  %vm1006_vm9 = vcmp.ge.u32.totalorder %v862_v32, 429496730  ;;  %v577_v39 = vshrl.u32 %v433_v34, 16  ;;  %v288_v40 = vor.u32 %v2515_v10, %v2410_v5  ;;  %v1442_v41 = vmul.f32 1.1111112, %v1298_v27 }
  0x5b   : > { %1869 = vst [vmem:[%s2490_s18 + $0x40] sm:$0xff] %v1725_v35  ;;  %v1582_v43 = vsel %vm1006_vm9, %v1438_v53, 0.0  ;;  %vm1007_vm10 = vcmp.ge.u32.totalorder %v863_v31, 429496730  ;;  %v864_v45 = vmul.u32 2654435761, %v720_v37  ;;  %v289_v44 = vor.u32 %v2515_v10, %v2413_v6 }
  0x5c   : > { %v1726_v46 = vadd.f32 %v1582_v43, %v1150_v36  ;;  %v1583_v47 = vsel %vm1007_vm10, %v1439_v59, 0.0  ;;  %v721_v50 = vxor.u32 %v577_v39, %v433_v34  ;;  %v434_v51 = vadd.s32 %v2451_v23, %v288_v40  ;;  %v1154_v28 = vld [vmem:[%s2393_s10 + $0x68] sm:$0xff]  ;;  %v1155_v32 = vld [vmem:[%s2393_s10 + $0x70] sm:$0xff]  ;;  %v1305_v31 = vld [vmem:[%s2445_s13 + $0xa0] sm:$0xff] }
  0x5d   : > { %v1727_v54 = vadd.f32 %v1583_v47, %v1151_v33  ;;  %vm1008_vm11 = vcmp.ge.u32.totalorder %v864_v45, 429496730  ;;  %v435_v55 = vadd.s32 %v2451_v23, %v289_v44  ;;  %v1443_v53 = vmul.f32 1.1111112, %v1299_v42 }
  0x5e   : > { %1870 = vst [vmem:[%s2490_s18 + $0x48] sm:$0xff] %v1726_v46  ;;  %v1584_v57 = vsel %vm1008_vm11, %v1440_v63, 0.0  ;;  %v865_v49 = vmul.u32 2654435761, %v721_v50  ;;  %v578_v60 = vshrl.u32 %v434_v51, 16  ;;  %v290_v59 = vor.u32 %v2515_v10, %v2416_v7  ;;  %v1156_v46 = vld [vmem:[%s2393_s10 + $0x78] sm:$0xff] }
  0x5f   : > { %1871 = vst [vmem:[%s2490_s18 + $0x50] sm:$0xff] %v1727_v54  ;;  %v1728_v61 = vadd.f32 %v1584_v57, %v1152_v48  ;;  %v579_v0 = vshrl.u32 %v435_v55, 16  ;;  %v1444_v4 = vmul.f32 1.1111112, %v1300_v52  ;;  %v291_v11 = vor.u32 %v2515_v10, %v2419_v8  ;;  %v1306_v57 = vld [vmem:[%s2445_s13 + $0xa8] sm:$0xff] }
  0x60   : > { %vm1009_vm12 = vcmp.ge.u32.totalorder %v865_v49, 429496730  ;;  %v722_v15 = vxor.u32 %v578_v60, %v434_v51  ;;  %v436_v63 = vadd.s32 %v2451_v23, %v290_v59  ;;  %v1445_v19 = vmul.f32 1.1111112, %v1301_v56  ;;  %v1157_v51 = vld [vmem:[%s2393_s10 + $0x80] sm:$0xff]  ;;  %v1158_v59 = vld [vmem:[%s2393_s10 + $0x88] sm:$0xff] }
  0x61   : > { %1872 = vst [vmem:[%s2490_s18 + $0x58] sm:$0xff] %v1728_v61  ;;  %v1585_v20 = vsel %vm1009_vm12, %v1441_v38, 0.0  ;;  %v723_v21 = vxor.u32 %v579_v0, %v435_v55  ;;  %v437_v29 = vadd.s32 %v2451_v23, %v291_v11  ;;  %v292_v22 = vor.u32 %v2515_v10, %v2422_v9 }
  0x62   : > { %v1729_v25 = vadd.f32 %v1585_v20, %v1153_v62  ;;  %v866_v58 = vmul.u32 2654435761, %v722_v15  ;;  %v580_v26 = vshrl.u32 %v436_v63, 16  ;;  %v1446_v27 = vmul.f32 1.1111112, %v1302_v12  ;;  %v1307_v12 = vld [vmem:[%s2445_s13 + $0xb0] sm:$0xff] }
  0x63   : > { %v867_v30 = vmul.u32 2654435761, %v723_v21  ;;  %v581_v34 = vshrl.u32 %v437_v29, 16  ;;  %v438_v35 = vadd.s32 %v2451_v23, %v292_v22  ;;  %v223_v36 = vadd.s32 %v2405_v3, %v2427_v13  ;;  %v1308_v21 = vld [vmem:[%s2445_s13 + $0xb8] sm:$0xff] }
  0x64   : > { %1873 = vst [vmem:[%s2490_s18 + $0x60] sm:$0xff] %v1729_v25  ;;  %vm1010_vm13 = vcmp.ge.u32.totalorder %v866_v58, 429496730  ;;  %v724_v10 = vxor.u32 %v580_v26, %v436_v63  ;;  %v2563_v33 = vmul.f32 1.1111112, %v1303_v24 }
  0x65   : > { %v2565_v37 = vmul.f32 1.1111112, %v1304_v16  ;;  %v1586_v38 = vsel %vm1010_vm13, %v1442_v41, 0.0  ;;  %vm1011_vm14 = vcmp.ge.u32.totalorder %v867_v30, 429496730  ;;  %v725_v39 = vxor.u32 %v581_v34, %v437_v29  ;;  %v1160_v30 = vld [vmem:[%s2393_s10 + $0x98] sm:$0xff] }
  0x66   : > { %v582_v40 = vshrl.u32 %v438_v35, 16  ;;  %v1730_v42 = vadd.f32 %v1586_v38, %v1154_v28  ;;  %v1587_v43 = vsel %vm1011_vm14, %v1443_v53, 0.0  ;;  %v868_v45 = vmul.u32 2654435761, %v724_v10  ;;  %v1161_v38 = vld [vmem:[%s2393_s10 + $0xa0] sm:$0xff] }
  0x67   : > { %v254_v13 = vshll.u32 %v223_v36, 10  ;;  %v1731_v44 = vadd.f32 %v1587_v43, %v1155_v32  ;;  %v869_v47 = vmul.u32 2654435761, %v725_v39  ;;  %v2568_v50 = vmul.f32 1.1111112, %v1305_v31  ;;  %v1162_v39 = vld [vmem:[%s2393_s10 + $0xa8] sm:$0xff] }
  0x68   : > { %v726_v48 = vxor.u32 %v582_v40, %v438_v35  ;;  %1874 = vst [vmem:[%s2490_s18 + $0x68] sm:$0xff] %v1730_v42  ;;  %vm1012_vm15 = vcmp.ge.u32.totalorder %v868_v45, 429496730  ;;  %v2588_v26 = vmul.f32 1.1111112, %v1307_v12  ;;  %v224_v42 = vadd.s32 %v2405_v3, %v2430_v14  ;;  %v1163_v12 = vld [vmem:[%s2393_s10 + $0xb0] sm:$0xff] }
  0x69   : > { %v293_v41 = vor.u32 %v254_v13, %v2403_v2  ;;  %v294_v52 = vor.u32 %v254_v13, %v2410_v5  ;;  %v295_v54 = vor.u32 %v254_v13, %v2413_v6  ;;  %1875 = vst [vmem:[%s2490_s18 + $0x70] sm:$0xff] %v1731_v44  ;;  %v1588_v55 = vsel %vm1012_vm15, %v1444_v4, 0.0  ;;  %v1309_v44 = vld [vmem:[%s2445_s13 + $0xc0] sm:$0xff] }
  0x6a   : > { %vm1013_vm0 = vcmp.ge.u32.totalorder %v869_v47, 429496730  ;;  %v870_v53 = vmul.u32 2654435761, %v726_v48  ;;  %v296_v56 = vor.u32 %v254_v13, %v2416_v7  ;;  %v1732_v49 = vadd.f32 %v1588_v55, %v1156_v46  ;;  %v1310_v46 = vld [vmem:[%s2445_s13 + $0xc8] sm:$0xff] }
  0x6b   : > { %v1589_v60 = vsel %vm1013_vm0, %v1445_v19, 0.0  ;;  %v439_v61 = vadd.s32 %v2451_v23, %v293_v41  ;;  %v440_v62 = vadd.s32 %v2451_v23, %v294_v52  ;;  %v441_v11 = vadd.s32 %v2451_v23, %v295_v54 }
  0x6c   : > { %v1733_v0 = vadd.f32 %v1589_v60, %v1157_v51  ;;  %vm1014_vm1 = vcmp.ge.u32.totalorder %v870_v53, 429496730  ;;  %v442_v4 = vadd.s32 %v2451_v23, %v296_v56  ;;  %1876 = vst [vmem:[%s2490_s18 + $0x78] sm:$0xff] %v1732_v49  ;;  %v1450_v19 = vmul.f32 1.1111112, %v1306_v57  ;;  %v1311_v53 = vld [vmem:[%s2445_s13 + $0xd0] sm:$0xff] }
  0x6d   : > { %v1590_v15 = vsel %vm1014_vm1, %v1446_v27, 0.0  ;;  %v583_v63 = vshrl.u32 %v439_v61, 16  ;;  %v584_v20 = vshrl.u32 %v440_v62, 16  ;;  %v585_v22 = vshrl.u32 %v441_v11, 16  ;;  %v1159_v27 = vld [vmem:[%s2393_s10 + $0x90] sm:$0xff] }
  0x6e   : > { %1877 = vst [vmem:[%s2490_s18 + $0x80] sm:$0xff] %v1733_v0  ;;  %v1734_v29 = vadd.f32 %v1590_v15, %v1158_v59  ;;  %v586_v24 = vshrl.u32 %v442_v4, 16  ;;  %v297_v16 = vor.u32 %v254_v13, %v2419_v8  ;;  %v298_v28 = vor.u32 %v254_v13, %v2422_v9  ;;  %v1312_v59 = vld [vmem:[%s2445_s13 + $0xd8] sm:$0xff] }
  0x6f   : > { %v727_v25 = vxor.u32 %v583_v63, %v439_v61  ;;  %v728_v58 = vxor.u32 %v584_v20, %v440_v62  ;;  %v729_v32 = vxor.u32 %v585_v22, %v441_v11  ;;  %v1452_v36 = vmul.f32 1.1111112, %v1308_v21  ;;  %v1164_v15 = vld [vmem:[%s2393_s10 + $0xb8] sm:$0xff] }
  0x70   : > { %1878 = vst [vmem:[%s2490_s18 + $0x88] sm:$0xff] %v1734_v29  ;;  %v730_v34 = vxor.u32 %v586_v24, %v442_v4  ;;  %v443_v35 = vadd.s32 %v2451_v23, %v297_v16  ;;  %v444_v40 = vadd.s32 %v2451_v23, %v298_v28  ;;  %v2604_v47 = vadd.s32 %v2405_v3, %v2437_v17  ;;  %v1313_v24 = vld [vmem:[%s2445_s13 + $0xe0] sm:$0xff] }
  0x71   : > { %v871_v31 = vmul.u32 2654435761, %v727_v25  ;;  %v872_v10 = vmul.u32 2654435761, %v728_v58  ;;  %v2606_v51 = vshll.u32 %v224_v42, 10 }
  0x72   : > { %v873_v43 = vmul.u32 2654435761, %v729_v32  ;;  %v874_v45 = vmul.u32 2654435761, %v730_v34  ;;  %v587_v13 = vshrl.u32 %v443_v35, 16  ;;  %v588_v48 = vshrl.u32 %v444_v40, 16 }
  0x73   : > { %vm1015_vm2 = vcmp.ge.u32.totalorder %v871_v31, 429496730  ;;  %vm1016_vm3 = vcmp.ge.u32.totalorder %v872_v10, 429496730  ;;  %v300_v61 = vor.u32 %v2606_v51, %v2410_v5  ;;  %v1454_v62 = vmul.f32 1.1111112, %v1310_v46 }
  0x74   : > { %v1591_v14 = vsel %vm1015_vm2, %v2563_v33, 0.0  ;;  %v1592_v41 = vsel %vm1016_vm3, %v2565_v37, 0.0  ;;  %vm1017_vm4 = vcmp.ge.u32.totalorder %v873_v43, 429496730  ;;  %vm1018_vm5 = vcmp.ge.u32.totalorder %v874_v45, 429496730 }
  0x75   : > { %v1735_v52 = vadd.f32 %v1591_v14, %v1159_v27  ;;  %v1736_v54 = vadd.f32 %v1592_v41, %v1160_v30  ;;  %v1593_v17 = vsel %vm1017_vm4, %v2568_v50, 0.0  ;;  %v1594_v55 = vsel %vm1018_vm5, %v1450_v19, 0.0  ;;  %v1314_v27 = vld [vmem:[%s2445_s13 + $0xe8] sm:$0xff] }
  0x76   : > { %v1737_v56 = vadd.f32 %v1593_v17, %v1161_v38  ;;  %v1738_v57 = vadd.f32 %v1594_v55, %v1162_v39  ;;  %v731_v49 = vxor.u32 %v587_v13, %v443_v35  ;;  %v732_v60 = vxor.u32 %v588_v48, %v444_v40  ;;  %v1315_v40 = vld [vmem:[%s2445_s13 + $0xf0] sm:$0xff]  ;;  %v1165_v48 = vld [vmem:[%s2393_s10 + $0xc0] sm:$0xff]  ;;  %v1166_v14 = vld [vmem:[%s2393_s10 + $0xc8] sm:$0xff] }
  0x77   : > { %1879 = vst [vmem:[%s2490_s18 + $0x90] sm:$0xff] %v1735_v52  ;;  %1880 = vst [vmem:[%s2490_s18 + $0x98] sm:$0xff] %v1736_v54  ;;  %v299_v33 = vor.u32 %v2606_v51, %v2403_v2  ;;  %v1453_v37 = vmul.f32 1.1111112, %v1309_v44  ;;  %v301_v11 = vor.u32 %v2606_v51, %v2413_v6  ;;  %v1455_v4 = vmul.f32 1.1111112, %v1311_v53 }
  0x78   : > { %1881 = vst [vmem:[%s2490_s18 + $0xa0] sm:$0xff] %v1737_v56  ;;  %1882 = vst [vmem:[%s2490_s18 + $0xa8] sm:$0xff] %v1738_v57  ;;  %v875_v50 = vmul.u32 2654435761, %v731_v49  ;;  %v876_v0 = vmul.u32 2654435761, %v732_v60  ;;  %v446_v20 = vadd.s32 %v2451_v23, %v300_v61  ;;  %v302_v19 = vor.u32 %v2606_v51, %v2416_v7 }
  0x79   : > { %v445_v63 = vadd.s32 %v2451_v23, %v299_v33  ;;  %v2629_v21 = vmul.f32 1.1111112, %v1312_v59  ;;  %v447_v29 = vadd.s32 %v2451_v23, %v301_v11  ;;  %v303_v22 = vor.u32 %v2606_v51, %v2419_v8  ;;  %v1168_v61 = vld [vmem:[%s2393_s10 + $0xd8] sm:$0xff]  ;;  %v1169_v11 = vld [vmem:[%s2393_s10 + $0xe0] sm:$0xff] }
  0x7a   : > { %vm1019_vm6 = vcmp.ge.u32.totalorder %v875_v50, 429496730  ;;  %vm1020_vm7 = vcmp.ge.u32.totalorder %v876_v0, 429496730  ;;  %v590_v28 = vshrl.u32 %v446_v20, 16  ;;  %v448_v35 = vadd.s32 %v2451_v23, %v302_v19 }
  0x7b   : > { %v1595_v16 = vsel %vm1019_vm6, %v2588_v26, 0.0  ;;  %v1596_v25 = vsel %vm1020_vm7, %v1452_v36, 0.0  ;;  %v589_v58 = vshrl.u32 %v445_v63, 16  ;;  %v591_v34 = vshrl.u32 %v447_v29, 16 }
  0x7c   : > { %v1739_v30 = vadd.f32 %v1595_v16, %v1163_v12  ;;  %v1740_v32 = vadd.f32 %v1596_v25, %v1164_v15  ;;  %v734_v10 = vxor.u32 %v590_v28, %v446_v20  ;;  %v449_v38 = vadd.s32 %v2451_v23, %v303_v22  ;;  %v1318_v20 = vld [vmem:[%s2445_s13 + $0x108] sm:$0xff]  ;;  %v1319_v16 = vld [vmem:[%s2445_s13 + $0x110] sm:$0xff] }
  0x7d   : > { %v733_v31 = vxor.u32 %v589_v58, %v445_v63  ;;  %v1457_v39 = vmul.f32 1.1111112, %v1313_v24  ;;  %v735_v26 = vxor.u32 %v591_v34, %v447_v29  ;;  %v592_v36 = vshrl.u32 %v448_v35, 16  ;;  %v1317_v63 = vld [vmem:[%s2445_s13 + $0x100] sm:$0xff] }
  0x7e   : > { %1883 = vst [vmem:[%s2490_s18 + $0xb0] sm:$0xff] %v1739_v30  ;;  %1884 = vst [vmem:[%s2490_s18 + $0xb8] sm:$0xff] %v1740_v32  ;;  %v304_v42 = vor.u32 %v2606_v51, %v2422_v9  ;;  %v2644_v43 = vmul.f32 1.1111112, %v1314_v27  ;;  %v878_v13 = vmul.u32 2654435761, %v734_v10 }
  0x7f   : > { %v877_v45 = vmul.u32 2654435761, %v733_v31  ;;  %v593_v44 = vshrl.u32 %v449_v38, 16  ;;  %v2647_v46 = vshll.u32 %v2604_v47, 10  ;;  %v879_v41 = vmul.u32 2654435761, %v735_v26 }
  0x80   : > { %v736_v52 = vxor.u32 %v592_v36, %v448_v35  ;;  %v450_v54 = vadd.s32 %v2451_v23, %v304_v42  ;;  %v2652_v17 = vmul.f32 1.1111112, %v1315_v40  ;;  %vm1022_vm9 = vcmp.ge.u32.totalorder %v878_v13, 429496730  ;;  %v1167_v51 = vld [vmem:[%s2393_s10 + $0xd0] sm:$0xff]  ;;  %v1316_v47 = vld [vmem:[%s2445_s13 + $0xf8] sm:$0xff] }
  0x81   : > { %vm1021_vm8 = vcmp.ge.u32.totalorder %v877_v45, 429496730  ;;  %v737_v55 = vxor.u32 %v593_v44, %v449_v38  ;;  %v305_v53 = vor.u32 %v2647_v46, %v2403_v2  ;;  %v1598_v57 = vsel %vm1022_vm9, %v1454_v62, 0.0  ;;  %v1170_v35 = vld [vmem:[%s2393_s10 + $0xe8] sm:$0xff]  ;;  %v1171_v45 = vld [vmem:[%s2393_s10 + $0xf0] sm:$0xff] }
  0x82   : > { %v1597_v56 = vsel %vm1021_vm8, %v1453_v37, 0.0  ;;  %vm1023_vm10 = vcmp.ge.u32.totalorder %v879_v41, 429496730  ;;  %v880_v49 = vmul.u32 2654435761, %v736_v52  ;;  %v1742_v59 = vadd.f32 %v1598_v57, %v1166_v14  ;;  %v1320_v14 = vld [vmem:[%s2445_s13 + $0x118] sm:$0xff] }
  0x83   : > { %v1741_v60 = vadd.f32 %v1597_v56, %v1165_v48  ;;  %v1599_v33 = vsel %vm1023_vm10, %v1455_v4, 0.0  ;;  %v881_v50 = vmul.u32 2654435761, %v737_v55  ;;  %v594_v12 = vshrl.u32 %v450_v54, 16  ;;  %v1172_v56 = vld [vmem:[%s2393_s10 + $0xf8] sm:$0xff] }
  0x84   : > { %v1743_v0 = vadd.f32 %v1599_v33, %v1167_v51  ;;  %vm1024_vm11 = vcmp.ge.u32.totalorder %v880_v49, 429496730  ;;  %v451_v15 = vadd.s32 %v2451_v23, %v305_v53  ;;  %1886 = vst [vmem:[%s2490_s18 + $0xc8] sm:$0xff] %v1742_v59  ;;  %v306_v62 = vor.u32 %v2647_v46, %v2410_v5  ;;  %v1321_v53 = vld [vmem:[%s2445_s13 + $0x120] sm:$0xff] }
  0x85   : > { %1885 = vst [vmem:[%s2490_s18 + $0xc0] sm:$0xff] %v1741_v60  ;;  %v1600_v37 = vsel %vm1024_vm11, %v2629_v21, 0.0  ;;  %vm1025_vm12 = vcmp.ge.u32.totalorder %v881_v50, 429496730  ;;  %v1460_v4 = vmul.f32 1.1111112, %v1316_v47  ;;  %v738_v22 = vxor.u32 %v594_v12, %v450_v54 }
  0x86   : > { %1887 = vst [vmem:[%s2490_s18 + $0xd0] sm:$0xff] %v1743_v0  ;;  %v1744_v19 = vadd.f32 %v1600_v37, %v1168_v61  ;;  %v1601_v29 = vsel %vm1025_vm12, %v1457_v39, 0.0  ;;  %v595_v24 = vshrl.u32 %v451_v15, 16  ;;  %v452_v58 = vadd.s32 %v2451_v23, %v306_v62  ;;  %v1173_v33 = vld [vmem:[%s2393_s10 + $0x100] sm:$0xff]  ;;  %v1174_v61 = vld [vmem:[%s2393_s10 + $0x108] sm:$0xff]  ;;  %v1175_v12 = vld [vmem:[%s2393_s10 + $0x110] sm:$0xff] }
  0x87   : > { %v1745_v25 = vadd.f32 %v1601_v29, %v1169_v11  ;;  %v307_v21 = vor.u32 %v2647_v46, %v2413_v6  ;;  %v1461_v28 = vmul.f32 1.1111112, %v1317_v63  ;;  %v882_v27 = vmul.u32 2654435761, %v738_v22 }
  0x88   : > { %1888 = vst [vmem:[%s2490_s18 + $0xd8] sm:$0xff] %v1744_v19  ;;  %v739_v30 = vxor.u32 %v595_v24, %v451_v15  ;;  %v308_v32 = vor.u32 %v2647_v46, %v2416_v7  ;;  %v1462_v34 = vmul.f32 1.1111112, %v1318_v20  ;;  %v596_v31 = vshrl.u32 %v452_v58, 16  ;;  %v1322_v19 = vld [vmem:[%s2445_s13 + $0x128] sm:$0xff] }
  0x89   : > { %1889 = vst [vmem:[%s2490_s18 + $0xe0] sm:$0xff] %v1745_v25  ;;  %v453_v10 = vadd.s32 %v2451_v23, %v307_v21  ;;  %v309_v38 = vor.u32 %v2647_v46, %v2419_v8  ;;  %v1463_v39 = vmul.f32 1.1111112, %v1319_v16  ;;  %vm1026_vm13 = vcmp.ge.u32.totalorder %v882_v27, 429496730  ;;  %v1176_v16 = vld [vmem:[%s2393_s10 + $0x118] sm:$0xff] }
  0x8a   : > { %v883_v40 = vmul.u32 2654435761, %v739_v30  ;;  %v454_v26 = vadd.s32 %v2451_v23, %v308_v32  ;;  %v310_v36 = vor.u32 %v2647_v46, %v2422_v9  ;;  %v1602_v42 = vsel %vm1026_vm13, %v2644_v43, 0.0  ;;  %v1324_v30 = vld [vmem:[%s2445_s13 + $0x138] sm:$0xff] }
  0x8b   : > { %v740_v13 = vxor.u32 %v596_v31, %v452_v58  ;;  %v597_v44 = vshrl.u32 %v453_v10, 16  ;;  %v455_v48 = vadd.s32 %v2451_v23, %v309_v38  ;;  %v1746_v41 = vadd.f32 %v1602_v42, %v1170_v35  ;;  %v1323_v58 = vld [vmem:[%s2445_s13 + $0x130] sm:$0xff] }
  0x8c   : > { %vm1027_vm14 = vcmp.ge.u32.totalorder %v883_v40, 429496730  ;;  %v598_v52 = vshrl.u32 %v454_v26, 16  ;;  %v456_v54 = vadd.s32 %v2451_v23, %v310_v36  ;;  %v1464_v60 = vmul.f32 1.1111112, %v1320_v14  ;;  %v1326_v36 = vld [vmem:[%s2445_s13 + $0x148] sm:$0xff] }
  0x8d   : > { %v1603_v51 = vsel %vm1027_vm14, %v2652_v17, 0.0  ;;  %v884_v46 = vmul.u32 2654435761, %v740_v13  ;;  %v741_v55 = vxor.u32 %v597_v44, %v453_v10  ;;  %v599_v43 = vshrl.u32 %v455_v48, 16  ;;  %1890 = vst [vmem:[%s2490_s18 + $0xe8] sm:$0xff] %v1746_v41  ;;  %v1325_v10 = vld [vmem:[%s2445_s13 + $0x140] sm:$0xff] }
  0x8e   : > { %v1747_v47 = vadd.f32 %v1603_v51, %v1171_v45  ;;  %v742_v57 = vxor.u32 %v598_v52, %v454_v26  ;;  %v600_v49 = vshrl.u32 %v456_v54, 16  ;;  %v226_v17 = vadd.s32 %v2405_v3, %v2440_v18 }
  0x8f   : > { %vm1028_vm15 = vcmp.ge.u32.totalorder %v884_v46, 429496730  ;;  %v885_v59 = vmul.u32 2654435761, %v741_v55  ;;  %v743_v50 = vxor.u32 %v599_v43, %v455_v48  ;;  %v2699_v63 = vmul.f32 1.1111112, %v1321_v53 }
  0x90   : > { %1891 = vst [vmem:[%s2490_s18 + $0xf0] sm:$0xff] %v1747_v47  ;;  %v1604_v0 = vsel %vm1028_vm15, %v1460_v4, 0.0  ;;  %v886_v11 = vmul.u32 2654435761, %v742_v57  ;;  %v744_v15 = vxor.u32 %v600_v49, %v456_v54  ;;  %v257_v20 = vshll.u32 %v226_v17, 10  ;;  %v1327_v54 = vld [vmem:[%s2445_s13 + $0x150] sm:$0xff] }
  0x91   : > { %v1748_v37 = vadd.f32 %v1604_v0, %v1172_v56  ;;  %vm1029_vm0 = vcmp.ge.u32.totalorder %v885_v59, 429496730  ;;  %v887_v62 = vmul.u32 2654435761, %v743_v50  ;;  %v202_v22 = vadd.s32 56, %v2401_v1  ;;  %v1328_v49 = vld [vmem:[%s2445_s13 + $0x158] sm:$0xff] }
  0x92   : > { %v1605_v29 = vsel %vm1029_vm0, %v1461_v28, 0.0  ;;  %vm1030_vm1 = vcmp.ge.u32.totalorder %v886_v11, 429496730  ;;  %v888_v18 = vmul.u32 2654435761, %v744_v15  ;;  %v311_v25 = vor.u32 %v257_v20, %v2403_v2  ;;  %v1177_v50 = vld [vmem:[%s2393_s10 + $0x120] sm:$0xff] }
  0x93   : > { %1892 = vst [vmem:[%s2490_s18 + $0xf8] sm:$0xff] %v1748_v37  ;;  %v1749_v4 = vadd.f32 %v1605_v29, %v1173_v33  ;;  %v1606_v24 = vsel %vm1030_vm1, %v1462_v34, 0.0  ;;  %vm1031_vm2 = vcmp.ge.u32.totalorder %v887_v62, 429496730  ;;  %v312_v28 = vor.u32 %v257_v20, %v2410_v5  ;;  %v1178_v15 = vld [vmem:[%s2393_s10 + $0x128] sm:$0xff] }
  0x94   : > { %v1750_v21 = vadd.f32 %v1606_v24, %v1174_v61  ;;  %v1607_v27 = vsel %vm1031_vm2, %v1463_v39, 0.0  ;;  %vm1032_vm3 = vcmp.ge.u32.totalorder %v888_v18, 429496730  ;;  %v457_v34 = vadd.s32 %v2451_v23, %v311_v25  ;;  %v1179_v18 = vld [vmem:[%s2393_s10 + $0x130] sm:$0xff]  ;;  %v1180_v25 = vld [vmem:[%s2393_s10 + $0x138] sm:$0xff] }
  0x95   : > { %1893 = vst [vmem:[%s2490_s18 + $0x100] sm:$0xff] %v1749_v4  ;;  %v1751_v32 = vadd.f32 %v1607_v27, %v1175_v12  ;;  %v1608_v35 = vsel %vm1032_vm3, %v1464_v60, 0.0  ;;  %v1466_v31 = vmul.f32 1.1111112, %v1322_v19  ;;  %v458_v40 = vadd.s32 %v2451_v23, %v312_v28  ;;  %v1181_v27 = vld [vmem:[%s2393_s10 + $0x140] sm:$0xff] }
  0x96   : > { %1894 = vst [vmem:[%s2490_s18 + $0x108] sm:$0xff] %v1750_v21  ;;  %v1752_v38 = vadd.f32 %v1608_v35, %v1176_v16  ;;  %v313_v39 = vor.u32 %v257_v20, %v2413_v6  ;;  %v1467_v26 = vmul.f32 1.1111112, %v1323_v58  ;;  %v601_v42 = vshrl.u32 %v457_v34, 16 }
  0x97   : > { %1895 = vst [vmem:[%s2490_s18 + $0x110] sm:$0xff] %v1751_v32  ;;  %v314_v45 = vor.u32 %v257_v20, %v2416_v7  ;;  %v1468_v13 = vmul.f32 1.1111112, %v1324_v30  ;;  %v315_v44 = vor.u32 %v257_v20, %v2419_v8  ;;  %v602_v48 = vshrl.u32 %v458_v40, 16  ;;  %v1182_v30 = vld [vmem:[%s2393_s10 + $0x148] sm:$0xff] }
  0x98   : > { %1896 = vst [vmem:[%s2490_s18 + $0x118] sm:$0xff] %v1752_v38  ;;  %v459_v14 = vadd.s32 %v2451_v23, %v313_v39  ;;  %v1469_v41 = vmul.f32 1.1111112, %v1325_v10  ;;  %v316_v52 = vor.u32 %v257_v20, %v2422_v9  ;;  %v745_v51 = vxor.u32 %v601_v42, %v457_v34  ;;  %v1329_v34 = vld [vmem:[%s2445_s13 + $0x160] sm:$0xff] }
  0x99   : > { %v460_v46 = vadd.s32 %v2451_v23, %v314_v45  ;;  %v461_v55 = vadd.s32 %v2451_v23, %v315_v44  ;;  %v1470_v43 = vmul.f32 1.1111112, %v1326_v36  ;;  %v746_v53 = vxor.u32 %v602_v48, %v458_v40  ;;  %v1330_v40 = vld [vmem:[%s2445_s13 + $0x168] sm:$0xff]  ;;  %v1331_v45 = vld [vmem:[%s2445_s13 + $0x170] sm:$0xff] }
  0x9a   : > { %v603_v47 = vshrl.u32 %v459_v14, 16  ;;  %v462_v56 = vadd.s32 %v2451_v23, %v316_v52  ;;  %v227_v57 = vadd.s32 %v2405_v3, %v202_v22  ;;  %v889_v60 = vmul.u32 2654435761, %v745_v51  ;;  %v1332_v52 = vld [vmem:[%s2445_s13 + $0x178] sm:$0xff] }
  0x9b   : > { %v604_v59 = vshrl.u32 %v460_v46, 16  ;;  %v605_v33 = vshrl.u32 %v461_v55, 16  ;;  %v2728_v61 = vmul.f32 1.1111112, %v1327_v54  ;;  %v890_v17 = vmul.u32 2654435761, %v746_v53 }
  0x9c   : > { %v747_v0 = vxor.u32 %v603_v47, %v459_v14  ;;  %v606_v11 = vshrl.u32 %v462_v56, 16  ;;  %v2731_v12 = vshll.u32 %v227_v57, 10  ;;  %vm1033_vm4 = vcmp.ge.u32.totalorder %v889_v60, 429496730 }
  0x9d   : > { %v748_v37 = vxor.u32 %v604_v59, %v460_v46  ;;  %v749_v62 = vxor.u32 %v605_v33, %v461_v55  ;;  %v2734_v20 = vmul.f32 1.1111112, %v1328_v49  ;;  %v1609_v19 = vsel %vm1033_vm4, %v2699_v63, 0.0 }
  0x9e   : > { %vm1034_vm5 = vcmp.ge.u32.totalorder %v890_v17, 429496730  ;;  %v891_v29 = vmul.u32 2654435761, %v747_v0  ;;  %v750_v22 = vxor.u32 %v606_v11, %v462_v56  ;;  %v1753_v4 = vadd.f32 %v1609_v19, %v1177_v50  ;;  %v1333_v56 = vld [vmem:[%s2445_s13 + $0x180] sm:$0xff]  ;;  %v1334_v11 = vld [vmem:[%s2445_s13 + $0x188] sm:$0xff] }
  0x9f   : > { %v1610_v24 = vsel %vm1034_vm5, %v1466_v31, 0.0  ;;  %v892_v16 = vmul.u32 2654435761, %v748_v37  ;;  %v893_v58 = vmul.u32 2654435761, %v749_v62  ;;  %v317_v63 = vor.u32 %v2731_v12, %v2403_v2  ;;  %v1183_v19 = vld [vmem:[%s2393_s10 + $0x150] sm:$0xff] }
  0xa0   : > { %v1754_v21 = vadd.f32 %v1610_v24, %v1178_v15  ;;  %vm1035_vm6 = vcmp.ge.u32.totalorder %v891_v29, 429496730  ;;  %v894_v28 = vmul.u32 2654435761, %v750_v22  ;;  %1897 = vst [vmem:[%s2490_s18 + $0x120] sm:$0xff] %v1753_v4  ;;  %v318_v35 = vor.u32 %v2731_v12, %v2410_v5  ;;  %v1184_v24 = vld [vmem:[%s2393_s10 + $0x158] sm:$0xff] }
  0xa1   : > { %v1611_v32 = vsel %vm1035_vm6, %v1467_v26, 0.0  ;;  %vm1036_vm7 = vcmp.ge.u32.totalorder %v892_v16, 429496730  ;;  %vm1037_vm8 = vcmp.ge.u32.totalorder %v893_v58, 429496730  ;;  %v463_v42 = vadd.s32 %v2451_v23, %v317_v63  ;;  %v1185_v16 = vld [vmem:[%s2393_s10 + $0x160] sm:$0xff] }
  0xa2   : > { %1898 = vst [vmem:[%s2490_s18 + $0x128] sm:$0xff] %v1754_v21  ;;  %v1755_v31 = vadd.f32 %v1611_v32, %v1179_v18  ;;  %v1612_v10 = vsel %vm1036_vm7, %v1468_v13, 0.0  ;;  %v1613_v38 = vsel %vm1037_vm8, %v1469_v41, 0.0  ;;  %vm1038_vm9 = vcmp.ge.u32.totalorder %v894_v28, 429496730  ;;  %v1187_v63 = vld [vmem:[%s2393_s10 + $0x170] sm:$0xff] }
  0xa3   : > { %v1756_v39 = vadd.f32 %v1612_v10, %v1180_v25  ;;  %v1757_v36 = vadd.f32 %v1613_v38, %v1181_v27  ;;  %v1614_v26 = vsel %vm1038_vm9, %v1470_v43, 0.0  ;;  %v464_v48 = vadd.s32 %v2451_v23, %v318_v35  ;;  %v1188_v38 = vld [vmem:[%s2393_s10 + $0x178] sm:$0xff] }
  0xa4   : > { %1899 = vst [vmem:[%s2490_s18 + $0x130] sm:$0xff] %v1755_v31  ;;  %v1758_v44 = vadd.f32 %v1614_v26, %v1182_v30  ;;  %v319_v14 = vor.u32 %v2731_v12, %v2413_v6  ;;  %v1473_v13 = vmul.f32 1.1111112, %v1329_v34  ;;  %v607_v41 = vshrl.u32 %v463_v42, 16  ;;  %v1186_v30 = vld [vmem:[%s2393_s10 + $0x168] sm:$0xff]  ;;  %v1335_v26 = vld [vmem:[%s2445_s13 + $0x190] sm:$0xff] }
  0xa5   : > { %1900 = vst [vmem:[%s2490_s18 + $0x138] sm:$0xff] %v1756_v39  ;;  %1901 = vst [vmem:[%s2490_s18 + $0x140] sm:$0xff] %v1757_v36  ;;  %v320_v54 = vor.u32 %v2731_v12, %v2416_v7  ;;  %v1474_v51 = vmul.f32 1.1111112, %v1330_v40  ;;  %v321_v46 = vor.u32 %v2731_v12, %v2419_v8  ;;  %v608_v55 = vshrl.u32 %v464_v48, 16 }
  0xa6   : > { %1902 = vst [vmem:[%s2490_s18 + $0x148] sm:$0xff] %v1758_v44  ;;  %v465_v43 = vadd.s32 %v2451_v23, %v319_v14  ;;  %v1475_v53 = vmul.f32 1.1111112, %v1331_v45  ;;  %v322_v47 = vor.u32 %v2731_v12, %v2422_v9  ;;  %v751_v57 = vxor.u32 %v607_v41, %v463_v42 }
  0xa7   : > { %v466_v49 = vadd.s32 %v2451_v23, %v320_v54  ;;  %v467_v60 = vadd.s32 %v2451_v23, %v321_v46  ;;  %v1476_v59 = vmul.f32 1.1111112, %v1332_v52  ;;  %v752_v33 = vxor.u32 %v608_v55, %v464_v48  ;;  %v1336_v48 = vld [vmem:[%s2445_s13 + $0x198] sm:$0xff] }
  0xa8   : > { %v609_v50 = vshrl.u32 %v465_v43, 16  ;;  %v468_v17 = vadd.s32 %v2451_v23, %v322_v47  ;;  %v203_v0 = vadd.s32 64, %v2401_v1  ;;  %v895_v15 = vmul.u32 2654435761, %v751_v57 }
  0xa9   : > { %v610_v37 = vshrl.u32 %v466_v49, 16  ;;  %v611_v62 = vshrl.u32 %v467_v60, 16  ;;  %v2772_v12 = vmul.f32 1.1111112, %v1333_v56  ;;  %v896_v29 = vmul.u32 2654435761, %v752_v33 }
  0xaa   : > { %v753_v18 = vxor.u32 %v609_v50, %v465_v43  ;;  %v612_v22 = vshrl.u32 %v468_v17, 16  ;;  %v228_v4 = vadd.s32 %v2405_v3, %v203_v0  ;;  %vm1039_vm10 = vcmp.ge.u32.totalorder %v895_v15, 429496730 }
  0xab   : > { %v754_v25 = vxor.u32 %v610_v37, %v466_v49  ;;  %v755_v58 = vxor.u32 %v611_v62, %v467_v60  ;;  %v2778_v21 = vmul.f32 1.1111112, %v1334_v11  ;;  %v1615_v27 = vsel %vm1039_vm10, %v2728_v61, 0.0 }
  0xac   : > { %vm1040_vm11 = vcmp.ge.u32.totalorder %v896_v29, 429496730  ;;  %v897_v28 = vmul.u32 2654435761, %v753_v18  ;;  %v756_v32 = vxor.u32 %v612_v22, %v468_v17  ;;  %v1759_v35 = vadd.f32 %v1615_v27, %v1183_v19  ;;  %v1339_v17 = vld [vmem:[%s2445_s13 + $0x1b0] sm:$0xff]  ;;  %v1340_v22 = vld [vmem:[%s2445_s13 + $0x1b8] sm:$0xff] }
  0xad   : > { %v1616_v34 = vsel %vm1040_vm11, %v2734_v20, 0.0  ;;  %v898_v31 = vmul.u32 2654435761, %v754_v25  ;;  %v899_v10 = vmul.u32 2654435761, %v755_v58  ;;  %v259_v36 = vshll.u32 %v228_v4, 10 }
  0xae   : > { %v1760_v40 = vadd.f32 %v1616_v34, %v1184_v24  ;;  %vm1041_vm12 = vcmp.ge.u32.totalorder %v897_v28, 429496730  ;;  %v900_v39 = vmul.u32 2654435761, %v756_v32  ;;  %1903 = vst [vmem:[%s2490_s18 + $0x150] sm:$0xff] %v1759_v35  ;;  %v204_v42 = vadd.s32 72, %v2401_v1 }
  0xaf   : > { %v1617_v61 = vsel %vm1041_vm12, %v1473_v13, 0.0  ;;  %vm1042_vm13 = vcmp.ge.u32.totalorder %v898_v31, 429496730  ;;  %vm1043_vm14 = vcmp.ge.u32.totalorder %v899_v10, 429496730  ;;  %v323_v54 = vor.u32 %v259_v36, %v2403_v2  ;;  %v1337_v13 = vld [vmem:[%s2445_s13 + $0x1a0] sm:$0xff] }
  0xb0   : > { %1904 = vst [vmem:[%s2490_s18 + $0x158] sm:$0xff] %v1760_v40  ;;  %v1761_v20 = vadd.f32 %v1617_v61, %v1185_v16  ;;  %v1618_v45 = vsel %vm1042_vm13, %v1474_v51, 0.0  ;;  %v1619_v44 = vsel %vm1043_vm14, %v1475_v53, 0.0  ;;  %vm1044_vm15 = vcmp.ge.u32.totalorder %v900_v39, 429496730  ;;  %v1338_v51 = vld [vmem:[%s2445_s13 + $0x1a8] sm:$0xff] }
  0xb1   : > { %v1762_v14 = vadd.f32 %v1618_v45, %v1186_v30  ;;  %v1763_v52 = vadd.f32 %v1619_v44, %v1187_v63  ;;  %v1620_v41 = vsel %vm1044_vm15, %v1476_v59, 0.0  ;;  %v324_v55 = vor.u32 %v259_v36, %v2410_v5  ;;  %v1189_v32 = vld [vmem:[%s2393_s10 + $0x180] sm:$0xff]  ;;  %v1191_v39 = vld [vmem:[%s2393_s10 + $0x190] sm:$0xff]  ;;  %v1192_v44 = vld [vmem:[%s2393_s10 + $0x198] sm:$0xff] }
  0xb2   : > { %1905 = vst [vmem:[%s2490_s18 + $0x160] sm:$0xff] %v1761_v20  ;;  %v1764_v46 = vadd.f32 %v1620_v41, %v1188_v38  ;;  %v325_v43 = vor.u32 %v259_v36, %v2413_v6  ;;  %v1479_v47 = vmul.f32 1.1111112, %v1335_v26  ;;  %v469_v53 = vadd.s32 %v2451_v23, %v323_v54  ;;  %v1190_v38 = vld [vmem:[%s2393_s10 + $0x188] sm:$0xff]  ;;  %v1193_v54 = vld [vmem:[%s2393_s10 + $0x1a0] sm:$0xff] }
  0xb3   : > { %1906 = vst [vmem:[%s2490_s18 + $0x168] sm:$0xff] %v1762_v14  ;;  %1907 = vst [vmem:[%s2490_s18 + $0x170] sm:$0xff] %v1763_v52  ;;  %v326_v56 = vor.u32 %v259_v36, %v2416_v7  ;;  %v1480_v57 = vmul.f32 1.1111112, %v1336_v48  ;;  %v327_v49 = vor.u32 %v259_v36, %v2419_v8  ;;  %v470_v60 = vadd.s32 %v2451_v23, %v324_v55 }
  0xb4   : > { %1908 = vst [vmem:[%s2490_s18 + $0x178] sm:$0xff] %v1764_v46  ;;  %v471_v59 = vadd.s32 %v2451_v23, %v325_v43  ;;  %v1481_v33 = vmul.f32 1.1111112, %v1337_v13  ;;  %v328_v50 = vor.u32 %v259_v36, %v2422_v9  ;;  %v613_v0 = vshrl.u32 %v469_v53, 16  ;;  %v1341_v13 = vld [vmem:[%s2445_s13 + $0x1c0] sm:$0xff]  ;;  %v1342_v43 = vld [vmem:[%s2445_s13 + $0x1c8] sm:$0xff] }
  0xb5   : > { %v472_v11 = vadd.s32 %v2451_v23, %v326_v56  ;;  %v473_v15 = vadd.s32 %v2451_v23, %v327_v49  ;;  %v2808_v37 = vmul.f32 1.1111112, %v1338_v51  ;;  %v614_v62 = vshrl.u32 %v470_v60, 16 }
  0xb6   : > { %v615_v19 = vshrl.u32 %v471_v59, 16  ;;  %v474_v29 = vadd.s32 %v2451_v23, %v328_v50  ;;  %v229_v18 = vadd.s32 %v2405_v3, %v204_v42  ;;  %v757_v4 = vxor.u32 %v613_v0, %v469_v53  ;;  %v1343_v50 = vld [vmem:[%s2445_s13 + $0x1d0] sm:$0xff] }
  0xb7   : > { %v616_v24 = vshrl.u32 %v472_v11, 16  ;;  %v617_v16 = vshrl.u32 %v473_v15, 16  ;;  %v2813_v25 = vmul.f32 1.1111112, %v1339_v17  ;;  %v758_v58 = vxor.u32 %v614_v62, %v470_v60 }
  0xb8   : > { %v759_v27 = vxor.u32 %v615_v19, %v471_v59  ;;  %v618_v28 = vshrl.u32 %v474_v29, 16  ;;  %v2815_v30 = vshll.u32 %v229_v18, 10  ;;  %v901_v63 = vmul.u32 2654435761, %v757_v4 }
  0xb9   : > { %v760_v35 = vxor.u32 %v616_v24, %v472_v11  ;;  %v761_v34 = vxor.u32 %v617_v16, %v473_v15  ;;  %v2818_v31 = vmul.f32 1.1111112, %v1340_v22  ;;  %v902_v10 = vmul.u32 2654435761, %v758_v58  ;;  %v1195_v16 = vld [vmem:[%s2393_s10 + $0x1b0] sm:$0xff] }
  0xba   : > { %v903_v40 = vmul.u32 2654435761, %v759_v27  ;;  %v762_v36 = vxor.u32 %v618_v28, %v474_v29  ;;  %v329_v26 = vor.u32 %v2815_v30, %v2403_v2  ;;  %vm1045_vm0 = vcmp.ge.u32.totalorder %v901_v63, 429496730  ;;  %v1344_v29 = vld [vmem:[%s2445_s13 + $0x1d8] sm:$0xff]  ;;  %v1345_v63 = vld [vmem:[%s2445_s13 + $0x1e0] sm:$0xff] }
  0xbb   : > { %v904_v61 = vmul.u32 2654435761, %v760_v35  ;;  %v905_v42 = vmul.u32 2654435761, %v761_v34  ;;  %v330_v20 = vor.u32 %v2815_v30, %v2410_v5  ;;  %v1621_v45 = vsel %vm1045_vm0, %v2772_v12, 0.0 }
  0xbc   : > { %vm1046_vm1 = vcmp.ge.u32.totalorder %v902_v10, 429496730  ;;  %vm1047_vm2 = vcmp.ge.u32.totalorder %v903_v40, 429496730  ;;  %v475_v48 = vadd.s32 %v2451_v23, %v329_v26  ;;  %v1765_v14 = vadd.f32 %v1621_v45, %v1189_v32  ;;  %v1196_v26 = vld [vmem:[%s2393_s10 + $0x1b8] sm:$0xff]  ;;  %v1346_v45 = vld [vmem:[%s2445_s13 + $0x1e8] sm:$0xff] }
  0xbd   : > { %v1622_v52 = vsel %vm1046_vm1, %v2778_v21, 0.0  ;;  %v1623_v41 = vsel %vm1047_vm2, %v1479_v47, 0.0  ;;  %vm1048_vm3 = vcmp.ge.u32.totalorder %v904_v61, 429496730  ;;  %vm1049_vm4 = vcmp.ge.u32.totalorder %v905_v42, 429496730 }
  0xbe   : > { %v1766_v46 = vadd.f32 %v1622_v52, %v1190_v38  ;;  %v1767_v55 = vadd.f32 %v1623_v41, %v1191_v39  ;;  %v1624_v12 = vsel %vm1048_vm3, %v1480_v57, 0.0  ;;  %1909 = vst [vmem:[%s2490_s18 + $0x180] sm:$0xff] %v1765_v14  ;;  %v1625_v53 = vsel %vm1049_vm4, %v1481_v33, 0.0  ;;  %v1194_v47 = vld [vmem:[%s2393_s10 + $0x1a8] sm:$0xff]  ;;  %v1197_v61 = vld [vmem:[%s2393_s10 + $0x1c0] sm:$0xff] }
  0xbf   : > { %v1768_v51 = vadd.f32 %v1624_v12, %v1192_v44  ;;  %v906_v56 = vmul.u32 2654435761, %v762_v36  ;;  %v619_v49 = vshrl.u32 %v475_v48, 16  ;;  %v1769_v21 = vadd.f32 %v1625_v53, %v1193_v54  ;;  %v1198_v41 = vld [vmem:[%s2393_s10 + $0x1c8] sm:$0xff] }
  0xc0   : > { %1910 = vst [vmem:[%s2490_s18 + $0x188] sm:$0xff] %v1766_v46  ;;  %1911 = vst [vmem:[%s2490_s18 + $0x190] sm:$0xff] %v1767_v55  ;;  %v476_v60 = vadd.s32 %v2451_v23, %v330_v20  ;;  %v331_v59 = vor.u32 %v2815_v30, %v2413_v6  ;;  %v1485_v57 = vmul.f32 1.1111112, %v1341_v13  ;;  %v332_v33 = vor.u32 %v2815_v30, %v2416_v7 }
  0xc1   : > { %1912 = vst [vmem:[%s2490_s18 + $0x198] sm:$0xff] %v1768_v51  ;;  %vm1050_vm5 = vcmp.ge.u32.totalorder %v906_v56, 429496730  ;;  %v763_v17 = vxor.u32 %v619_v49, %v475_v48  ;;  %v1486_v0 = vmul.f32 1.1111112, %v1342_v43  ;;  %1913 = vst [vmem:[%s2490_s18 + $0x1a0] sm:$0xff] %v1769_v21  ;;  %v333_v19 = vor.u32 %v2815_v30, %v2419_v8 }
  0xc2   : > { %v1626_v11 = vsel %vm1050_vm5, %v2808_v37, 0.0  ;;  %v620_v15 = vshrl.u32 %v476_v60, 16  ;;  %v477_v62 = vadd.s32 %v2451_v23, %v331_v59  ;;  %v478_v4 = vadd.s32 %v2451_v23, %v332_v33  ;;  %v1199_v51 = vld [vmem:[%s2393_s10 + $0x1d0] sm:$0xff] }
  0xc3   : > { %v1770_v18 = vadd.f32 %v1626_v11, %v1194_v47  ;;  %v907_v22 = vmul.u32 2654435761, %v763_v17  ;;  %v1487_v24 = vmul.f32 1.1111112, %v1343_v50  ;;  %v479_v28 = vadd.s32 %v2451_v23, %v333_v19  ;;  %v1347_v49 = vld [vmem:[%s2445_s13 + $0x1f0] sm:$0xff]  ;;  %v1200_v11 = vld [vmem:[%s2393_s10 + $0x1d8] sm:$0xff] }
  0xc4   : > { %v764_v58 = vxor.u32 %v620_v15, %v476_v60  ;;  %v621_v27 = vshrl.u32 %v477_v62, 16  ;;  %v334_v37 = vor.u32 %v2815_v30, %v2422_v9  ;;  %v622_v32 = vshrl.u32 %v478_v4, 16  ;;  %v1348_v60 = vld [vmem:[%s2445_s13 + $0x1f8] sm:$0xff] }
  0xc5   : > { %1914 = vst [vmem:[%s2490_s18 + $0x1a8] sm:$0xff] %v1770_v18  ;;  %vm1051_vm6 = vcmp.ge.u32.totalorder %v907_v22, 429496730  ;;  %v1488_v35 = vmul.f32 1.1111112, %v1344_v29  ;;  %v205_v34 = vadd.s32 80, %v2401_v1 }
  0xc6   : > { %v1627_v10 = vsel %vm1051_vm6, %v2813_v25, 0.0  ;;  %v908_v38 = vmul.u32 2654435761, %v764_v58  ;;  %v765_v40 = vxor.u32 %v621_v27, %v477_v62  ;;  %v623_v39 = vshrl.u32 %v479_v28, 16  ;;  %v1350_v27 = vld [vmem:[%s2445_s13 + $0x208] sm:$0xff] }
  0xc7   : > { %v1771_v36 = vadd.f32 %v1627_v10, %v1195_v16  ;;  %v766_v42 = vxor.u32 %v622_v32, %v478_v4  ;;  %v480_v30 = vadd.s32 %v2451_v23, %v334_v37  ;;  %v230_v20 = vadd.s32 %v2405_v3, %v205_v34 }
  0xc8   : > { %vm1052_vm7 = vcmp.ge.u32.totalorder %v908_v38, 429496730  ;;  %v909_v44 = vmul.u32 2654435761, %v765_v40  ;;  %v767_v48 = vxor.u32 %v623_v39, %v479_v28  ;;  %v2864_v14 = vmul.f32 1.1111112, %v1345_v63 }
  0xc9   : > { %1915 = vst [vmem:[%s2490_s18 + $0x1b0] sm:$0xff] %v1771_v36  ;;  %v1628_v25 = vsel %vm1052_vm7, %v2818_v31, 0.0  ;;  %v910_v52 = vmul.u32 2654435761, %v766_v42  ;;  %v624_v54 = vshrl.u32 %v480_v30, 16  ;;  %v261_v13 = vshll.u32 %v230_v20, 10 }
  0xca   : > { %v1772_v46 = vadd.f32 %v1628_v25, %v1196_v26  ;;  %vm1053_vm8 = vcmp.ge.u32.totalorder %v909_v44, 429496730  ;;  %v911_v55 = vmul.u32 2654435761, %v767_v48  ;;  %v2869_v12 = vmul.f32 1.1111112, %v1346_v45 }
  0xcb   : > { %v1629_v43 = vsel %vm1053_vm8, %v1485_v57, 0.0  ;;  %vm1054_vm9 = vcmp.ge.u32.totalorder %v910_v52, 429496730  ;;  %v768_v53 = vxor.u32 %v624_v54, %v480_v30  ;;  %v335_v56 = vor.u32 %v261_v13, %v2403_v2  ;;  %v1201_v42 = vld [vmem:[%s2393_s10 + $0x1e0] sm:$0xff]  ;;  %v1202_v48 = vld [vmem:[%s2393_s10 + $0x1e8] sm:$0xff] }
  0xcc   : > { %1916 = vst [vmem:[%s2490_s18 + $0x1b8] sm:$0xff] %v1772_v46  ;;  %v1773_v31 = vadd.f32 %v1629_v43, %v1197_v61  ;;  %v1630_v21 = vsel %vm1054_vm9, %v1486_v0, 0.0  ;;  %vm1055_vm10 = vcmp.ge.u32.totalorder %v911_v55, 429496730  ;;  %v336_v47 = vor.u32 %v261_v13, %v2410_v5  ;;  %v1349_v0 = vld [vmem:[%s2445_s13 + $0x200] sm:$0xff]  ;;  %v1352_v55 = vld [vmem:[%s2445_s13 + $0x218] sm:$0xff] }
  0xcd   : > { %v1774_v59 = vadd.f32 %v1630_v21, %v1198_v41  ;;  %v1631_v57 = vsel %vm1055_vm10, %v1487_v24, 0.0  ;;  %v912_v50 = vmul.u32 2654435761, %v768_v53  ;;  %v481_v17 = vadd.s32 %v2451_v23, %v335_v56  ;;  %v1203_v53 = vld [vmem:[%s2393_s10 + $0x1f0] sm:$0xff] }
  0xce   : > { %1917 = vst [vmem:[%s2490_s18 + $0x1c0] sm:$0xff] %v1773_v31  ;;  %v1775_v33 = vadd.f32 %v1631_v57, %v1199_v51  ;;  %v482_v15 = vadd.s32 %v2451_v23, %v336_v47  ;;  %v337_v62 = vor.u32 %v261_v13, %v2413_v6  ;;  %v1491_v19 = vmul.f32 1.1111112, %v1347_v49  ;;  %v1204_v49 = vld [vmem:[%s2393_s10 + $0x1f8] sm:$0xff] }
  0xcf   : > { %1918 = vst [vmem:[%s2490_s18 + $0x1c8] sm:$0xff] %v1774_v59  ;;  %vm1056_vm11 = vcmp.ge.u32.totalorder %v912_v50, 429496730  ;;  %v625_v29 = vshrl.u32 %v481_v17, 16  ;;  %v338_v18 = vor.u32 %v261_v13, %v2416_v7  ;;  %v1492_v22 = vmul.f32 1.1111112, %v1348_v60 }
  0xd0   : > { %1919 = vst [vmem:[%s2490_s18 + $0x1d0] sm:$0xff] %v1775_v33  ;;  %v1632_v4 = vsel %vm1056_vm11, %v1488_v35, 0.0  ;;  %v626_v24 = vshrl.u32 %v482_v15, 16  ;;  %v483_v16 = vadd.s32 %v2451_v23, %v337_v62  ;;  %v339_v58 = vor.u32 %v261_v13, %v2419_v8  ;;  %v1351_v35 = vld [vmem:[%s2445_s13 + $0x210] sm:$0xff]  ;;  %v1205_v60 = vld [vmem:[%s2393_s10 + $0x200] sm:$0xff] }
  0xd1   : > { %v1776_v28 = vadd.f32 %v1632_v4, %v1200_v11  ;;  %v769_v37 = vxor.u32 %v625_v29, %v481_v17  ;;  %v484_v63 = vadd.s32 %v2451_v23, %v338_v18  ;;  %v1493_v32 = vmul.f32 1.1111112, %v1349_v0  ;;  %v1206_v4 = vld [vmem:[%s2393_s10 + $0x208] sm:$0xff] }
  0xd2   : > { %v770_v34 = vxor.u32 %v626_v24, %v482_v15  ;;  %v627_v10 = vshrl.u32 %v483_v16, 16  ;;  %v485_v38 = vadd.s32 %v2451_v23, %v339_v58  ;;  %v340_v40 = vor.u32 %v261_v13, %v2422_v9  ;;  %v1354_v15 = vld [vmem:[%s2445_s13 + $0x228] sm:$0xff] }
  0xd3   : > { %1920 = vst [vmem:[%s2490_s18 + $0x1d8] sm:$0xff] %v1776_v28  ;;  %v913_v39 = vmul.u32 2654435761, %v769_v37  ;;  %v628_v36 = vshrl.u32 %v484_v63, 16  ;;  %v2894_v26 = vmul.f32 1.1111112, %v1350_v27 }
  0xd4   : > { %v206_v61 = vadd.s32 88, %v2401_v1  ;;  %v914_v30 = vmul.u32 2654435761, %v770_v34  ;;  %v771_v20 = vxor.u32 %v627_v10, %v483_v16  ;;  %v629_v45 = vshrl.u32 %v485_v38, 16 }
  0xd5   : > { %v486_v44 = vadd.s32 %v2451_v23, %v340_v40  ;;  %vm1057_vm12 = vcmp.ge.u32.totalorder %v913_v39, 429496730  ;;  %v772_v25 = vxor.u32 %v628_v36, %v484_v63  ;;  %v2901_v41 = vmul.f32 1.1111112, %v1351_v35 }
  0xd6   : > { %v231_v52 = vadd.s32 %v2405_v3, %v206_v61  ;;  %v1633_v54 = vsel %vm1057_vm12, %v2864_v14, 0.0  ;;  %vm1058_vm13 = vcmp.ge.u32.totalorder %v914_v30, 429496730  ;;  %v915_v13 = vmul.u32 2654435761, %v771_v20 }
  0xd7   : > { %v773_v46 = vxor.u32 %v629_v45, %v485_v38  ;;  %v1777_v43 = vadd.f32 %v1633_v54, %v1201_v42  ;;  %v1634_v51 = vsel %vm1058_vm13, %v2869_v12, 0.0  ;;  %v916_v56 = vmul.u32 2654435761, %v772_v25  ;;  %v1353_v12 = vld [vmem:[%s2445_s13 + $0x220] sm:$0xff]  ;;  %v1356_v38 = vld [vmem:[%s2445_s13 + $0x238] sm:$0xff] }
  0xd8   : > { %v630_v31 = vshrl.u32 %v486_v44, 16  ;;  %v1778_v21 = vadd.f32 %v1634_v51, %v1202_v48  ;;  %vm1059_vm14 = vcmp.ge.u32.totalorder %v915_v13, 429496730  ;;  %v262_v14 = vshll.u32 %v231_v52, 10  ;;  %v1208_v51 = vld [vmem:[%s2393_s10 + $0x218] sm:$0xff] }
  0xd9   : > { %v917_v47 = vmul.u32 2654435761, %v773_v46  ;;  %1921 = vst [vmem:[%s2490_s18 + $0x1e0] sm:$0xff] %v1777_v43  ;;  %v1635_v59 = vsel %vm1059_vm14, %v1491_v19, 0.0  ;;  %vm1060_vm15 = vcmp.ge.u32.totalorder %v916_v56, 429496730 }
  0xda   : > { %v774_v57 = vxor.u32 %v630_v31, %v486_v44  ;;  %v2910_v50 = vmul.f32 1.1111112, %v1352_v55  ;;  %1922 = vst [vmem:[%s2490_s18 + $0x1e8] sm:$0xff] %v1778_v21  ;;  %v1779_v17 = vadd.f32 %v1635_v59, %v1203_v53  ;;  %v1636_v33 = vsel %vm1060_vm15, %v1492_v22, 0.0  ;;  %v1355_v22 = vld [vmem:[%s2445_s13 + $0x230] sm:$0xff]  ;;  %v1209_v21 = vld [vmem:[%s2393_s10 + $0x220] sm:$0xff] }
  0xdb   : > { %vm1061_vm0 = vcmp.ge.u32.totalorder %v917_v47, 429496730  ;;  %v341_v11 = vor.u32 %v262_v14, %v2403_v2  ;;  %v1780_v62 = vadd.f32 %v1636_v33, %v1204_v49  ;;  %v342_v19 = vor.u32 %v262_v14, %v2410_v5  ;;  %v1207_v55 = vld [vmem:[%s2393_s10 + $0x210] sm:$0xff]  ;;  %v1210_v33 = vld [vmem:[%s2393_s10 + $0x228] sm:$0xff] }
  0xdc   : > { %v1637_v0 = vsel %vm1061_vm0, %v1493_v32, 0.0  ;;  %v918_v29 = vmul.u32 2654435761, %v774_v57  ;;  %1923 = vst [vmem:[%s2490_s18 + $0x1f0] sm:$0xff] %v1779_v17  ;;  %v343_v16 = vor.u32 %v262_v14, %v2413_v6  ;;  %v1497_v58 = vmul.f32 1.1111112, %v1353_v12 }
  0xdd   : > { %v1781_v18 = vadd.f32 %v1637_v0, %v1205_v60  ;;  %v487_v24 = vadd.s32 %v2451_v23, %v341_v11  ;;  %1924 = vst [vmem:[%s2490_s18 + $0x1f8] sm:$0xff] %v1780_v62  ;;  %v488_v27 = vadd.s32 %v2451_v23, %v342_v19  ;;  %v344_v28 = vor.u32 %v262_v14, %v2416_v7  ;;  %v1211_v0 = vld [vmem:[%s2393_s10 + $0x230] sm:$0xff] }
  0xde   : > { %vm1062_vm1 = vcmp.ge.u32.totalorder %v918_v29, 429496730  ;;  %v1498_v37 = vmul.f32 1.1111112, %v1354_v15  ;;  %v489_v34 = vadd.s32 %v2451_v23, %v343_v16  ;;  %v345_v10 = vor.u32 %v262_v14, %v2419_v8 }
  0xdf   : > { %1925 = vst [vmem:[%s2490_s18 + $0x200] sm:$0xff] %v1781_v18  ;;  %v1638_v63 = vsel %vm1062_vm1, %v2894_v26, 0.0  ;;  %v631_v32 = vshrl.u32 %v487_v24, 16  ;;  %v632_v35 = vshrl.u32 %v488_v27, 16  ;;  %v490_v39 = vadd.s32 %v2451_v23, %v344_v28  ;;  %v1357_v26 = vld [vmem:[%s2445_s13 + $0x240] sm:$0xff] }
  0xe0   : > { %v1782_v40 = vadd.f32 %v1638_v63, %v1206_v4  ;;  %v1499_v36 = vmul.f32 1.1111112, %v1355_v22  ;;  %v633_v42 = vshrl.u32 %v489_v34, 16  ;;  %v491_v30 = vadd.s32 %v2451_v23, %v345_v10  ;;  %v1359_v4 = vld [vmem:[%s2445_s13 + $0x250] sm:$0xff]  ;;  %v1212_v63 = vld [vmem:[%s2393_s10 + $0x238] sm:$0xff] }
  0xe1   : > { %v775_v61 = vxor.u32 %v631_v32, %v487_v24  ;;  %v346_v20 = vor.u32 %v262_v14, %v2422_v9  ;;  %v776_v45 = vxor.u32 %v632_v35, %v488_v27  ;;  %v634_v44 = vshrl.u32 %v490_v39, 16  ;;  %v1360_v27 = vld [vmem:[%s2445_s13 + $0x258] sm:$0xff]  ;;  %v1361_v35 = vld [vmem:[%s2445_s13 + $0x260] sm:$0xff] }
  0xe2   : > { %1926 = vst [vmem:[%s2490_s18 + $0x208] sm:$0xff] %v1782_v40  ;;  %v2935_v48 = vmul.f32 1.1111112, %v1356_v38  ;;  %v207_v25 = vadd.s32 96, %v2401_v1  ;;  %v777_v54 = vxor.u32 %v633_v42, %v489_v34  ;;  %v635_v13 = vshrl.u32 %v491_v30, 16 }
  0xe3   : > { %v919_v52 = vmul.u32 2654435761, %v775_v61  ;;  %v492_v46 = vadd.s32 %v2451_v23, %v346_v20  ;;  %v920_v43 = vmul.u32 2654435761, %v776_v45  ;;  %v778_v53 = vxor.u32 %v634_v44, %v490_v39 }
  0xe4   : > { %v232_v56 = vadd.s32 %v2405_v3, %v207_v25  ;;  %v2942_v49 = vmul.f32 1.1111112, %v1357_v26  ;;  %v921_v31 = vmul.u32 2654435761, %v777_v54  ;;  %v779_v47 = vxor.u32 %v635_v13, %v491_v30  ;;  %v1362_v30 = vld [vmem:[%s2445_s13 + $0x268] sm:$0xff] }
  0xe5   : > { %vm1063_vm2 = vcmp.ge.u32.totalorder %v919_v52, 429496730  ;;  %v636_v60 = vshrl.u32 %v492_v46, 16  ;;  %vm1064_vm3 = vcmp.ge.u32.totalorder %v920_v43, 429496730 }
  0xe6   : > { %v1639_v14 = vsel %vm1063_vm2, %v2901_v41, 0.0  ;;  %v922_v59 = vmul.u32 2654435761, %v778_v53  ;;  %v263_v57 = vshll.u32 %v232_v56, 10  ;;  %v1640_v17 = vsel %vm1064_vm3, %v2910_v50, 0.0  ;;  %v1358_v41 = vld [vmem:[%s2445_s13 + $0x248] sm:$0xff] }
  0xe7   : > { %v1783_v12 = vadd.f32 %v1639_v14, %v1207_v55  ;;  %vm1065_vm4 = vcmp.ge.u32.totalorder %v921_v31, 429496730  ;;  %v923_v11 = vmul.u32 2654435761, %v779_v47  ;;  %v1784_v15 = vadd.f32 %v1640_v17, %v1208_v51  ;;  %v1213_v47 = vld [vmem:[%s2393_s10 + $0x240] sm:$0xff] }
  0xe8   : > { %v1641_v62 = vsel %vm1065_vm4, %v1497_v58, 0.0  ;;  %vm1066_vm5 = vcmp.ge.u32.totalorder %v922_v59, 429496730  ;;  %v780_v29 = vxor.u32 %v636_v60, %v492_v46  ;;  %v347_v50 = vor.u32 %v263_v57, %v2403_v2  ;;  %v1363_v46 = vld [vmem:[%s2445_s13 + $0x270] sm:$0xff] }
  0xe9   : > { %1927 = vst [vmem:[%s2490_s18 + $0x210] sm:$0xff] %v1783_v12  ;;  %v1785_v19 = vadd.f32 %v1641_v62, %v1209_v21  ;;  %v1642_v18 = vsel %vm1066_vm5, %v1498_v37, 0.0  ;;  %vm1067_vm6 = vcmp.ge.u32.totalorder %v923_v11, 429496730  ;;  %1928 = vst [vmem:[%s2490_s18 + $0x218] sm:$0xff] %v1784_v15  ;;  %v348_v22 = vor.u32 %v263_v57, %v2410_v5  ;;  %v1214_v12 = vld [vmem:[%s2393_s10 + $0x248] sm:$0xff] }
  0xea   : > { %v1786_v24 = vadd.f32 %v1642_v18, %v1210_v33  ;;  %v1643_v16 = vsel %vm1067_vm6, %v1499_v36, 0.0  ;;  %v924_v58 = vmul.u32 2654435761, %v780_v29  ;;  %v493_v37 = vadd.s32 %v2451_v23, %v347_v50  ;;  %v1215_v62 = vld [vmem:[%s2393_s10 + $0x250] sm:$0xff]  ;;  %v1216_v18 = vld [vmem:[%s2393_s10 + $0x258] sm:$0xff] }
  0xeb   : > { %1929 = vst [vmem:[%s2490_s18 + $0x220] sm:$0xff] %v1785_v19  ;;  %v1787_v28 = vadd.f32 %v1643_v16, %v1211_v0  ;;  %v1502_v32 = vmul.f32 1.1111112, %v1358_v41  ;;  %v349_v34 = vor.u32 %v263_v57, %v2413_v6  ;;  %v494_v10 = vadd.s32 %v2451_v23, %v348_v22  ;;  %v1217_v22 = vld [vmem:[%s2393_s10 + $0x260] sm:$0xff] }
  0xec   : > { %1930 = vst [vmem:[%s2490_s18 + $0x228] sm:$0xff] %v1786_v24  ;;  %vm1068_vm7 = vcmp.ge.u32.totalorder %v924_v58, 429496730  ;;  %v1503_v38 = vmul.f32 1.1111112, %v1359_v4  ;;  %v350_v40 = vor.u32 %v263_v57, %v2416_v7  ;;  %v637_v36 = vshrl.u32 %v493_v37, 16 }
  0xed   : > { %1931 = vst [vmem:[%s2490_s18 + $0x230] sm:$0xff] %v1787_v28  ;;  %v1644_v39 = vsel %vm1068_vm7, %v2935_v48, 0.0  ;;  %v495_v61 = vadd.s32 %v2451_v23, %v349_v34  ;;  %v1504_v42 = vmul.f32 1.1111112, %v1360_v27  ;;  %v638_v26 = vshrl.u32 %v494_v10, 16  ;;  %v1364_v4 = vld [vmem:[%s2445_s13 + $0x278] sm:$0xff] }
  0xee   : > { %v1788_v20 = vadd.f32 %v1644_v39, %v1212_v63  ;;  %v496_v45 = vadd.s32 %v2451_v23, %v350_v40  ;;  %v351_v44 = vor.u32 %v263_v57, %v2419_v8  ;;  %v781_v25 = vxor.u32 %v637_v36, %v493_v37  ;;  %v1365_v24 = vld [vmem:[%s2445_s13 + $0x280] sm:$0xff]  ;;  %v1218_v37 = vld [vmem:[%s2393_s10 + $0x268] sm:$0xff] }
  0xef   : > { %v639_v52 = vshrl.u32 %v495_v61, 16  ;;  %v1505_v54 = vmul.f32 1.1111112, %v1361_v35  ;;  %v352_v13 = vor.u32 %v263_v57, %v2422_v9  ;;  %v782_v48 = vxor.u32 %v638_v26, %v494_v10  ;;  %v1366_v34 = vld [vmem:[%s2445_s13 + $0x288] sm:$0xff] }
  0xf0   : > { %1932 = vst [vmem:[%s2490_s18 + $0x238] sm:$0xff] %v1788_v20  ;;  %v640_v55 = vshrl.u32 %v496_v45, 16  ;;  %v497_v43 = vadd.s32 %v2451_v23, %v351_v44  ;;  %v1506_v51 = vmul.f32 1.1111112, %v1362_v30  ;;  %v925_v53 = vmul.u32 2654435761, %v781_v25 }
  0xf1   : > { %v783_v56 = vxor.u32 %v639_v52, %v495_v61  ;;  %v498_v31 = vadd.s32 %v2451_v23, %v352_v13  ;;  %v208_v21 = vadd.s32 104, %v2401_v1  ;;  %v926_v60 = vmul.u32 2654435761, %v782_v48  ;;  %v1367_v61 = vld [vmem:[%s2445_s13 + $0x290] sm:$0xff] }
  0xf2   : > { %v784_v14 = vxor.u32 %v640_v55, %v496_v45  ;;  %v641_v59 = vshrl.u32 %v497_v43, 16  ;;  %v2977_v57 = vmul.f32 1.1111112, %v1363_v46  ;;  %vm1069_vm8 = vcmp.ge.u32.totalorder %v925_v53, 429496730  ;;  %v1368_v45 = vld [vmem:[%s2445_s13 + $0x298] sm:$0xff] }
  0xf3   : > { %v927_v17 = vmul.u32 2654435761, %v783_v56  ;;  %v642_v33 = vshrl.u32 %v498_v31, 16  ;;  %v233_v11 = vadd.s32 %v2405_v3, %v208_v21  ;;  %v1645_v15 = vsel %vm1069_vm8, %v2942_v49, 0.0 }
  0xf4   : > { %vm1070_vm9 = vcmp.ge.u32.totalorder %v926_v60, 429496730  ;;  %v928_v0 = vmul.u32 2654435761, %v784_v14  ;;  %v785_v29 = vxor.u32 %v641_v59, %v497_v43  ;;  %v1789_v41 = vadd.f32 %v1645_v15, %v1213_v47  ;;  %v1369_v43 = vld [vmem:[%s2445_s13 + $0x2a0] sm:$0xff]  ;;  %v1220_v15 = vld [vmem:[%s2393_s10 + $0x278] sm:$0xff] }
  0xf5   : > { %v1646_v19 = vsel %vm1070_vm9, %v1502_v32, 0.0  ;;  %vm1071_vm10 = vcmp.ge.u32.totalorder %v927_v17, 429496730  ;;  %v786_v50 = vxor.u32 %v642_v33, %v498_v31  ;;  %v264_v32 = vshll.u32 %v233_v11, 10  ;;  %v1219_v11 = vld [vmem:[%s2393_s10 + $0x270] sm:$0xff] }
  0xf6   : > { %v1790_v16 = vadd.f32 %v1646_v19, %v1214_v12  ;;  %v1647_v58 = vsel %vm1071_vm10, %v1503_v38, 0.0  ;;  %vm1072_vm11 = vcmp.ge.u32.totalorder %v928_v0, 429496730  ;;  %v929_v49 = vmul.u32 2654435761, %v785_v29  ;;  %1933 = vst [vmem:[%s2490_s18 + $0x240] sm:$0xff] %v1789_v41 }
  0xf7   : > { %v1791_v27 = vadd.f32 %v1647_v58, %v1215_v62  ;;  %v1648_v28 = vsel %vm1072_vm11, %v1504_v42, 0.0  ;;  %v930_v63 = vmul.u32 2654435761, %v786_v50  ;;  %v2991_v40 = vmul.f32 1.1111112, %v1364_v4  ;;  %v1370_v19 = vld [vmem:[%s2445_s13 + $0x2a8] sm:$0xff] }
  0xf8   : > { %1934 = vst [vmem:[%s2490_s18 + $0x248] sm:$0xff] %v1790_v16  ;;  %v1792_v10 = vadd.f32 %v1648_v28, %v1216_v18  ;;  %vm1073_vm12 = vcmp.ge.u32.totalorder %v929_v49, 429496730  ;;  %v2993_v38 = vmul.f32 1.1111112, %v1365_v24  ;;  %v353_v39 = vor.u32 %v264_v32, %v2403_v2  ;;  %v1221_v4 = vld [vmem:[%s2393_s10 + $0x280] sm:$0xff] }
  0xf9   : > { %1935 = vst [vmem:[%s2490_s18 + $0x250] sm:$0xff] %v1791_v27  ;;  %v1649_v35 = vsel %vm1073_vm12, %v1505_v54, 0.0  ;;  %vm1074_vm13 = vcmp.ge.u32.totalorder %v930_v63, 429496730  ;;  %v354_v36 = vor.u32 %v264_v32, %v2410_v5  ;;  %v355_v20 = vor.u32 %v264_v32, %v2413_v6  ;;  %v1222_v24 = vld [vmem:[%s2393_s10 + $0x288] sm:$0xff]  ;;  %v1371_v63 = vld [vmem:[%s2445_s13 + $0x2b0] sm:$0xff] }
  0xfa   : > { %1936 = vst [vmem:[%s2490_s18 + $0x258] sm:$0xff] %v1792_v10  ;;  %v1793_v42 = vadd.f32 %v1649_v35, %v1217_v22  ;;  %v1650_v30 = vsel %vm1074_vm13, %v1506_v51, 0.0  ;;  %v356_v26 = vor.u32 %v264_v32, %v2416_v7  ;;  %v499_v25 = vadd.s32 %v2451_v23, %v353_v39 }
  0xfb   : > { %v1794_v44 = vadd.f32 %v1650_v30, %v1218_v37  ;;  %v500_v52 = vadd.s32 %v2451_v23, %v354_v36  ;;  %v1510_v54 = vmul.f32 1.1111112, %v1366_v34  ;;  %v501_v13 = vadd.s32 %v2451_v23, %v355_v20 }
  0xfc   : > { %1937 = vst [vmem:[%s2490_s18 + $0x260] sm:$0xff] %v1793_v42  ;;  %v502_v46 = vadd.s32 %v2451_v23, %v356_v26  ;;  %v357_v48 = vor.u32 %v264_v32, %v2419_v8  ;;  %v3009_v55 = vmul.f32 1.1111112, %v1367_v61  ;;  %v643_v51 = vshrl.u32 %v499_v25, 16  ;;  %v1372_v42 = vld [vmem:[%s2445_s13 + $0x2b8] sm:$0xff] }
  0xfd   : > { %1938 = vst [vmem:[%s2490_s18 + $0x268] sm:$0xff] %v1794_v44  ;;  %v644_v53 = vshrl.u32 %v500_v52, 16  ;;  %v358_v56 = vor.u32 %v264_v32, %v2422_v9  ;;  %v3014_v31 = vmul.f32 1.1111112, %v1368_v45  ;;  %v645_v21 = vshrl.u32 %v501_v13, 16  ;;  %v1224_v44 = vld [vmem:[%s2393_s10 + $0x298] sm:$0xff] }
  0xfe   : > { %v646_v47 = vshrl.u32 %v502_v46, 16  ;;  %v503_v60 = vadd.s32 %v2451_v23, %v357_v48  ;;  %v209_v14 = vadd.s32 112, %v2401_v1  ;;  %v787_v59 = vxor.u32 %v643_v51, %v499_v25 }
  0xff   : > { %v788_v12 = vxor.u32 %v644_v53, %v500_v52  ;;  %v504_v17 = vadd.s32 %v2451_v23, %v358_v56  ;;  %v3019_v33 = vmul.f32 1.1111112, %v1369_v43  ;;  %v789_v62 = vxor.u32 %v645_v21, %v501_v13  ;;  %v1373_v13 = vld [vmem:[%s2445_s13 + $0x2c0] sm:$0xff]  ;;  %v1374_v56 = vld [vmem:[%s2445_s13 + $0x2c8] sm:$0xff] }
 0x100   : > { %v790_v0 = vxor.u32 %v646_v47, %v502_v46  ;;  %v647_v29 = vshrl.u32 %v503_v60, 16  ;;  %v234_v41 = vadd.s32 %v2405_v3, %v209_v14  ;;  %v931_v18 = vmul.u32 2654435761, %v787_v59 }
 0x101   : > { %v932_v50 = vmul.u32 2654435761, %v788_v12  ;;  %v648_v16 = vshrl.u32 %v504_v17, 16  ;;  %v210_v58 = vadd.s32 120, %v2401_v1  ;;  %v933_v49 = vmul.u32 2654435761, %v789_v62 }
 0x102   : > { %v934_v22 = vmul.u32 2654435761, %v790_v0  ;;  %v791_v27 = vxor.u32 %v647_v29, %v503_v60  ;;  %v265_v28 = vshll.u32 %v234_v41, 10  ;;  %vm1075_vm14 = vcmp.ge.u32.totalorder %v931_v18, 429496730 }
 0x103   : > { %vm1076_vm15 = vcmp.ge.u32.totalorder %v932_v50, 429496730  ;;  %v792_v37 = vxor.u32 %v648_v16, %v504_v17  ;;  %v3029_v32 = vmul.f32 1.1111112, %v1370_v19  ;;  %v1651_v34 = vsel %vm1075_vm14, %v2977_v57, 0.0  ;;  %v1223_v57 = vld [vmem:[%s2393_s10 + $0x290] sm:$0xff] }
 0x104   : > { %v1652_v10 = vsel %vm1076_vm15, %v2991_v40, 0.0  ;;  %vm1077_vm0 = vcmp.ge.u32.totalorder %v933_v49, 429496730  ;;  %vm1078_vm1 = vcmp.ge.u32.totalorder %v934_v22, 429496730  ;;  %v1795_v35 = vadd.f32 %v1651_v34, %v1219_v11  ;;  %v1225_v50 = vld [vmem:[%s2393_s10 + $0x2a0] sm:$0xff] }
 0x105   : > { %v1796_v39 = vadd.f32 %v1652_v10, %v1220_v15  ;;  %v1653_v36 = vsel %vm1077_vm0, %v2993_v38, 0.0  ;;  %v1654_v61 = vsel %vm1078_vm1, %v1510_v54, 0.0  ;;  %v935_v26 = vmul.u32 2654435761, %v791_v27 }
 0x106   : > { %v1797_v30 = vadd.f32 %v1653_v36, %v1221_v4  ;;  %v1798_v20 = vadd.f32 %v1654_v61, %v1222_v24  ;;  %v936_v45 = vmul.u32 2654435761, %v792_v37  ;;  %1939 = vst [vmem:[%s2490_s18 + $0x270] sm:$0xff] %v1795_v35  ;;  %v359_v40 = vor.u32 %v265_v28, %v2403_v2  ;;  %v1226_v37 = vld [vmem:[%s2393_s10 + $0x2a8] sm:$0xff] }
 0x107   : > { %1940 = vst [vmem:[%s2490_s18 + $0x278] sm:$0xff] %v1796_v39  ;;  %v360_v25 = vor.u32 %v265_v28, %v2410_v5  ;;  %v361_v52 = vor.u32 %v265_v28, %v2413_v6  ;;  %v1515_v38 = vmul.f32 1.1111112, %v1371_v63  ;;  %vm1079_vm2 = vcmp.ge.u32.totalorder %v935_v26, 429496730  ;;  %v1228_v39 = vld [vmem:[%s2393_s10 + $0x2b8] sm:$0xff] }
 0x108   : > { %1941 = vst [vmem:[%s2490_s18 + $0x280] sm:$0xff] %v1797_v30  ;;  %1942 = vst [vmem:[%s2490_s18 + $0x288] sm:$0xff] %v1798_v20  ;;  %vm1080_vm3 = vcmp.ge.u32.totalorder %v936_v45, 429496730  ;;  %v362_v54 = vor.u32 %v265_v28, %v2416_v7  ;;  %v1516_v46 = vmul.f32 1.1111112, %v1372_v42  ;;  %v505_v51 = vadd.s32 %v2451_v23, %v359_v40 }
 0x109   : > { %v1655_v48 = vsel %vm1079_vm2, %v3009_v55, 0.0  ;;  %v1656_v43 = vsel %vm1080_vm3, %v3014_v31, 0.0  ;;  %v506_v53 = vadd.s32 %v2451_v23, %v360_v25  ;;  %v507_v60 = vadd.s32 %v2451_v23, %v361_v52  ;;  %v1375_v55 = vld [vmem:[%s2445_s13 + $0x2d0] sm:$0xff] }
 0x10a   : > { %v1799_v21 = vadd.f32 %v1655_v48, %v1223_v57  ;;  %v1800_v47 = vadd.f32 %v1656_v43, %v1224_v44  ;;  %v508_v14 = vadd.s32 %v2451_v23, %v362_v54  ;;  %v649_v59 = vshrl.u32 %v505_v51, 16  ;;  %v1376_v44 = vld [vmem:[%s2445_s13 + $0x2d8] sm:$0xff]  ;;  %v1377_v48 = vld [vmem:[%s2445_s13 + $0x2e0] sm:$0xff] }
 0x10b   : > { %v650_v12 = vshrl.u32 %v506_v53, 16  ;;  %v363_v17 = vor.u32 %v265_v28, %v2419_v8  ;;  %v3054_v11 = vmul.f32 1.1111112, %v1373_v13  ;;  %v651_v31 = vshrl.u32 %v507_v60, 16 }
 0x10c   : > { %1943 = vst [vmem:[%s2490_s18 + $0x290] sm:$0xff] %v1799_v21  ;;  %1944 = vst [vmem:[%s2490_s18 + $0x298] sm:$0xff] %v1800_v47  ;;  %v652_v15 = vshrl.u32 %v508_v14, 16  ;;  %v364_v62 = vor.u32 %v265_v28, %v2422_v9  ;;  %v3060_v0 = vmul.f32 1.1111112, %v1374_v56  ;;  %v793_v29 = vxor.u32 %v649_v59, %v505_v51  ;;  %v1230_v21 = vld [vmem:[%s2393_s10 + $0x2c8] sm:$0xff] }
 0x10d   : > { %v794_v41 = vxor.u32 %v650_v12, %v506_v53  ;;  %v509_v19 = vadd.s32 %v2451_v23, %v363_v17  ;;  %v235_v18 = vadd.s32 %v2405_v3, %v210_v58  ;;  %v795_v4 = vxor.u32 %v651_v31, %v507_v60  ;;  %v1227_v58 = vld [vmem:[%s2393_s10 + $0x2b0] sm:$0xff]  ;;  %v1378_v59 = vld [vmem:[%s2445_s13 + $0x2e8] sm:$0xff] }
 0x10e   : > { %v796_v24 = vxor.u32 %v652_v15, %v508_v14  ;;  %v510_v16 = vadd.s32 %v2451_v23, %v364_v62  ;;  %v3066_v49 = vmul.f32 1.1111112, %v1375_v55  ;;  %v937_v22 = vmul.u32 2654435761, %v793_v29  ;;  %v1379_v29 = vld [vmem:[%s2445_s13 + $0x2f0] sm:$0xff] }
 0x10f   : > { %v938_v27 = vmul.u32 2654435761, %v794_v41  ;;  %v653_v28 = vshrl.u32 %v509_v19, 16  ;;  %v3068_v63 = vshll.u32 %v235_v18, 10  ;;  %v939_v34 = vmul.u32 2654435761, %v795_v4 }
 0x110   : > { %v940_v10 = vmul.u32 2654435761, %v796_v24  ;;  %v654_v35 = vshrl.u32 %v510_v16, 16  ;;  %vm1081_vm4 = vcmp.ge.u32.totalorder %v937_v22, 429496730  ;;  %v1231_v22 = vld [vmem:[%s2393_s10 + $0x2d0] sm:$0xff] }
 0x111   : > { %vm1082_vm5 = vcmp.ge.u32.totalorder %v938_v27, 429496730  ;;  %v797_v36 = vxor.u32 %v653_v28, %v509_v19  ;;  %v365_v61 = vor.u32 %v3068_v63, %v2403_v2  ;;  %v1657_v42 = vsel %vm1081_vm4, %v3019_v33, 0.0  ;;  %v1229_v33 = vld [vmem:[%s2393_s10 + $0x2c0] sm:$0xff]  ;;  %v1232_v27 = vld [vmem:[%s2393_s10 + $0x2d8] sm:$0xff] }
 0x112   : > { %v1658_v30 = vsel %vm1082_vm5, %v3029_v32, 0.0  ;;  %vm1083_vm6 = vcmp.ge.u32.totalorder %v939_v34, 429496730  ;;  %vm1084_vm7 = vcmp.ge.u32.totalorder %v940_v10, 429496730  ;;  %v1801_v20 = vadd.f32 %v1657_v42, %v1225_v50  ;;  %v1233_v28 = vld [vmem:[%s2393_s10 + $0x2e0] sm:$0xff] }
 0x113   : > { %v1802_v26 = vadd.f32 %v1658_v30, %v1226_v37  ;;  %v1659_v45 = vsel %vm1083_vm6, %v1515_v38, 0.0  ;;  %v1660_v57 = vsel %vm1084_vm7, %v1516_v46, 0.0  ;;  %v941_v52 = vmul.u32 2654435761, %v797_v36  ;;  %v1234_v42 = vld [vmem:[%s2393_s10 + $0x2e8] sm:$0xff] }
 0x114   : > { %v1803_v40 = vadd.f32 %v1659_v45, %v1227_v58  ;;  %v1804_v25 = vadd.f32 %v1660_v57, %v1228_v39  ;;  %v798_v13 = vxor.u32 %v654_v35, %v510_v16  ;;  %1945 = vst [vmem:[%s2490_s18 + $0x2a0] sm:$0xff] %v1801_v20  ;;  %v511_v32 = vadd.s32 %v2451_v23, %v365_v61  ;;  %v1380_v57 = vld [vmem:[%s2445_s13 + $0x2f8] sm:$0xff] }
 0x115   : > { %1946 = vst [vmem:[%s2490_s18 + $0x2a8] sm:$0xff] %v1802_v26  ;;  %v366_v54 = vor.u32 %v3068_v63, %v2410_v5  ;;  %v367_v38 = vor.u32 %v3068_v63, %v2413_v6  ;;  %v211_v46 = vadd.s32 128, %v2401_v1  ;;  %vm1085_vm8 = vcmp.ge.u32.totalorder %v941_v52, 429496730  ;;  %v1381_v52 = vld [vmem:[%s2445_s13 + $0x300] sm:$0xff] }
 0x116   : > { %1947 = vst [vmem:[%s2490_s18 + $0x2b0] sm:$0xff] %v1803_v40  ;;  %1948 = vst [vmem:[%s2490_s18 + $0x2b8] sm:$0xff] %v1804_v25  ;;  %v942_v43 = vmul.u32 2654435761, %v798_v13  ;;  %v1520_v51 = vmul.f32 1.1111112, %v1376_v44  ;;  %v368_v53 = vor.u32 %v3068_v63, %v2416_v7  ;;  %v369_v50 = vor.u32 %v3068_v63, %v2419_v8 }
 0x117   : > { %v1661_v56 = vsel %vm1085_vm8, %v3054_v11, 0.0  ;;  %v655_v47 = vshrl.u32 %v511_v32, 16  ;;  %v512_v60 = vadd.s32 %v2451_v23, %v366_v54  ;;  %v513_v14 = vadd.s32 %v2451_v23, %v367_v38  ;;  %v1382_v54 = vld [vmem:[%s2445_s13 + $0x308] sm:$0xff] }
 0x118   : > { %v1805_v12 = vadd.f32 %v1661_v56, %v1229_v33  ;;  %vm1086_vm9 = vcmp.ge.u32.totalorder %v942_v43, 429496730  ;;  %v1521_v17 = vmul.f32 1.1111112, %v1377_v48  ;;  %v514_v55 = vadd.s32 %v2451_v23, %v368_v53 }
 0x119   : > { %v1662_v31 = vsel %vm1086_vm9, %v3060_v0, 0.0  ;;  %v799_v15 = vxor.u32 %v655_v47, %v511_v32  ;;  %v656_v11 = vshrl.u32 %v512_v60, 16  ;;  %v657_v62 = vshrl.u32 %v513_v14, 16 }
 0x11a   : > { %1949 = vst [vmem:[%s2490_s18 + $0x2c0] sm:$0xff] %v1805_v12  ;;  %v1806_v41 = vadd.f32 %v1662_v31, %v1230_v21  ;;  %v658_v19 = vshrl.u32 %v514_v55, 16  ;;  %v1522_v18 = vmul.f32 1.1111112, %v1378_v59  ;;  %v370_v0 = vor.u32 %v3068_v63, %v2422_v9  ;;  %v1383_v12 = vld [vmem:[%s2445_s13 + $0x310] sm:$0xff] }
 0x11b   : > { %v943_v4 = vmul.u32 2654435761, %v799_v15  ;;  %v800_v24 = vxor.u32 %v656_v11, %v512_v60  ;;  %v801_v16 = vxor.u32 %v657_v62, %v513_v14  ;;  %v515_v34 = vadd.s32 %v2451_v23, %v369_v50  ;;  %v1236_v60 = vld [vmem:[%s2393_s10 + $0x2f8] sm:$0xff] }
 0x11c   : > { %1950 = vst [vmem:[%s2490_s18 + $0x2c8] sm:$0xff] %v1806_v41  ;;  %v802_v37 = vxor.u32 %v658_v19, %v514_v55  ;;  %v1523_v10 = vmul.f32 1.1111112, %v1379_v29  ;;  %v236_v35 = vadd.s32 %v2405_v3, %v211_v46  ;;  %v516_v36 = vadd.s32 %v2451_v23, %v370_v0  ;;  %v1384_v11 = vld [vmem:[%s2445_s13 + $0x318] sm:$0xff] }
 0x11d   : > { %vm1087_vm10 = vcmp.ge.u32.totalorder %v943_v4, 429496730  ;;  %v944_v58 = vmul.u32 2654435761, %v800_v24  ;;  %v945_v39 = vmul.u32 2654435761, %v801_v16 }
 0x11e   : > { %v1663_v63 = vsel %vm1087_vm10, %v3066_v49, 0.0  ;;  %v946_v61 = vmul.u32 2654435761, %v802_v37  ;;  %v659_v30 = vshrl.u32 %v515_v34, 16  ;;  %v3114_v20 = vshll.u32 %v236_v35, 10  ;;  %v1386_v37 = vld [vmem:[%s2445_s13 + $0x328] sm:$0xff] }
 0x11f   : > { %v1807_v26 = vadd.f32 %v1663_v63, %v1231_v22  ;;  %vm1088_vm11 = vcmp.ge.u32.totalorder %v944_v58, 429496730  ;;  %vm1089_vm12 = vcmp.ge.u32.totalorder %v945_v39, 429496730  ;;  %v660_v45 = vshrl.u32 %v516_v36, 16  ;;  %v1238_v63 = vld [vmem:[%s2393_s10 + $0x308] sm:$0xff] }
 0x120   : > { %v1664_v44 = vsel %vm1088_vm11, %v1520_v51, 0.0  ;;  %v1665_v40 = vsel %vm1089_vm12, %v1521_v17, 0.0  ;;  %vm1090_vm13 = vcmp.ge.u32.totalorder %v946_v61, 429496730  ;;  %v803_v25 = vxor.u32 %v659_v30, %v515_v34  ;;  %v1235_v51 = vld [vmem:[%s2393_s10 + $0x2f0] sm:$0xff] }
 0x121   : > { %1951 = vst [vmem:[%s2490_s18 + $0x2d0] sm:$0xff] %v1807_v26  ;;  %v1808_v49 = vadd.f32 %v1664_v44, %v1232_v27  ;;  %v1809_v13 = vadd.f32 %v1665_v40, %v1233_v28  ;;  %v1666_v33 = vsel %vm1090_vm13, %v1522_v18, 0.0  ;;  %v804_v32 = vxor.u32 %v660_v45, %v516_v36  ;;  %v1385_v18 = vld [vmem:[%s2445_s13 + $0x320] sm:$0xff]  ;;  %v1239_v61 = vld [vmem:[%s2393_s10 + $0x310] sm:$0xff]  ;;  %v1240_v44 = vld [vmem:[%s2393_s10 + $0x318] sm:$0xff] }
 0x122   : > { %v1810_v38 = vadd.f32 %v1666_v33, %v1234_v42  ;;  %v947_v48 = vmul.u32 2654435761, %v803_v25  ;;  %v1524_v46 = vmul.f32 1.1111112, %v1380_v57  ;;  %v371_v43 = vor.u32 %v3114_v20, %v2403_v2  ;;  %v1237_v36 = vld [vmem:[%s2393_s10 + $0x300] sm:$0xff] }
 0x123   : > { %1952 = vst [vmem:[%s2490_s18 + $0x2d8] sm:$0xff] %v1808_v49  ;;  %1953 = vst [vmem:[%s2490_s18 + $0x2e0] sm:$0xff] %v1809_v13  ;;  %v948_v53 = vmul.u32 2654435761, %v804_v32  ;;  %v1525_v56 = vmul.f32 1.1111112, %v1381_v52  ;;  %v372_v21 = vor.u32 %v3114_v20, %v2410_v5  ;;  %v373_v47 = vor.u32 %v3114_v20, %v2413_v6 }
 0x124   : > { %1954 = vst [vmem:[%s2490_s18 + $0x2e8] sm:$0xff] %v1810_v38  ;;  %vm1091_vm14 = vcmp.ge.u32.totalorder %v947_v48, 429496730  ;;  %v517_v14 = vadd.s32 %v2451_v23, %v371_v43  ;;  %v1526_v59 = vmul.f32 1.1111112, %v1382_v54  ;;  %v374_v17 = vor.u32 %v3114_v20, %v2416_v7  ;;  %v1387_v13 = vld [vmem:[%s2445_s13 + $0x330] sm:$0xff] }
 0x125   : > { %v1667_v55 = vsel %vm1091_vm14, %v1523_v10, 0.0  ;;  %vm1092_vm15 = vcmp.ge.u32.totalorder %v948_v53, 429496730  ;;  %v518_v31 = vadd.s32 %v2451_v23, %v372_v21  ;;  %v519_v15 = vadd.s32 %v2451_v23, %v373_v47  ;;  %v1389_v43 = vld [vmem:[%s2445_s13 + $0x340] sm:$0xff] }
 0x126   : > { %v1811_v62 = vadd.f32 %v1667_v55, %v1235_v51  ;;  %v1668_v29 = vsel %vm1092_vm15, %v1524_v46, 0.0  ;;  %v661_v41 = vshrl.u32 %v517_v14, 16  ;;  %v520_v19 = vadd.s32 %v2451_v23, %v374_v17  ;;  %v1388_v46 = vld [vmem:[%s2445_s13 + $0x338] sm:$0xff]  ;;  %v1390_v17 = vld [vmem:[%s2445_s13 + $0x348] sm:$0xff] }
 0x127   : > { %v1812_v50 = vadd.f32 %v1668_v29, %v1236_v60  ;;  %v662_v4 = vshrl.u32 %v518_v31, 16  ;;  %v663_v24 = vshrl.u32 %v519_v15, 16  ;;  %v1527_v16 = vmul.f32 1.1111112, %v1383_v12 }
 0x128   : > { %1955 = vst [vmem:[%s2490_s18 + $0x2f0] sm:$0xff] %v1811_v62  ;;  %v805_v0 = vxor.u32 %v661_v41, %v517_v14  ;;  %v664_v22 = vshrl.u32 %v520_v19, 16  ;;  %v1528_v27 = vmul.f32 1.1111112, %v1384_v11  ;;  %v375_v28 = vor.u32 %v3114_v20, %v2419_v8 }
 0x129   : > { %1956 = vst [vmem:[%s2490_s18 + $0x2f8] sm:$0xff] %v1812_v50  ;;  %v806_v34 = vxor.u32 %v662_v4, %v518_v31  ;;  %v807_v10 = vxor.u32 %v663_v24, %v519_v15  ;;  %v1529_v35 = vmul.f32 1.1111112, %v1385_v18  ;;  %v376_v58 = vor.u32 %v3114_v20, %v2422_v9  ;;  %v1241_v15 = vld [vmem:[%s2393_s10 + $0x320] sm:$0xff] }
 0x12a   : > { %v949_v39 = vmul.u32 2654435761, %v805_v0  ;;  %v808_v42 = vxor.u32 %v664_v22, %v520_v19  ;;  %v521_v30 = vadd.s32 %v2451_v23, %v375_v28  ;;  %v212_v26 = vadd.s32 136, %v2401_v1  ;;  %v1242_v19 = vld [vmem:[%s2393_s10 + $0x328] sm:$0xff]  ;;  %v1391_v22 = vld [vmem:[%s2445_s13 + $0x350] sm:$0xff] }
 0x12b   : > { %v950_v45 = vmul.u32 2654435761, %v806_v34  ;;  %v951_v57 = vmul.u32 2654435761, %v807_v10  ;;  %v522_v40 = vadd.s32 %v2451_v23, %v376_v58  ;;  %v1530_v25 = vmul.f32 1.1111112, %v1386_v37 }
 0x12c   : > { %vm1093_vm0 = vcmp.ge.u32.totalorder %v949_v39, 429496730  ;;  %v952_v20 = vmul.u32 2654435761, %v808_v42  ;;  %v665_v52 = vshrl.u32 %v521_v30, 16  ;;  %v237_v49 = vadd.s32 %v2405_v3, %v212_v26  ;;  %v1393_v26 = vld [vmem:[%s2445_s13 + $0x360] sm:$0xff] }
 0x12d   : > { %v1669_v33 = vsel %vm1093_vm0, %v1525_v56, 0.0  ;;  %vm1094_vm1 = vcmp.ge.u32.totalorder %v950_v45, 429496730  ;;  %vm1095_vm2 = vcmp.ge.u32.totalorder %v951_v57, 429496730  ;;  %v666_v32 = vshrl.u32 %v522_v40, 16 }
 0x12e   : > { %v1813_v54 = vadd.f32 %v1669_v33, %v1237_v36  ;;  %v1670_v38 = vsel %vm1094_vm1, %v1526_v59, 0.0  ;;  %v1671_v48 = vsel %vm1095_vm2, %v1527_v16, 0.0  ;;  %vm1096_vm3 = vcmp.ge.u32.totalorder %v952_v20, 429496730  ;;  %v1392_v36 = vld [vmem:[%s2445_s13 + $0x358] sm:$0xff] }
 0x12f   : > { %v1814_v51 = vadd.f32 %v1670_v38, %v1238_v63  ;;  %v1815_v53 = vadd.f32 %v1671_v48, %v1239_v61  ;;  %v1672_v21 = vsel %vm1096_vm3, %v1528_v27, 0.0  ;;  %v809_v47 = vxor.u32 %v665_v52, %v521_v30  ;;  %v1244_v20 = vld [vmem:[%s2393_s10 + $0x338] sm:$0xff]  ;;  %v1245_v38 = vld [vmem:[%s2393_s10 + $0x340] sm:$0xff]  ;;  %v1246_v48 = vld [vmem:[%s2393_s10 + $0x348] sm:$0xff] }
 0x130   : > { %1957 = vst [vmem:[%s2490_s18 + $0x300] sm:$0xff] %v1813_v54  ;;  %v1816_v56 = vadd.f32 %v1672_v21, %v1240_v44  ;;  %v810_v60 = vxor.u32 %v666_v32, %v522_v40  ;;  %v268_v14 = vshll.u32 %v237_v49, 10  ;;  %v3159_v12 = vmul.f32 1.1111112, %v1387_v13 }
 0x131   : > { %1958 = vst [vmem:[%s2490_s18 + $0x308] sm:$0xff] %v1814_v51  ;;  %1959 = vst [vmem:[%s2490_s18 + $0x310] sm:$0xff] %v1815_v53  ;;  %v953_v59 = vmul.u32 2654435761, %v809_v47  ;;  %v3164_v55 = vmul.f32 1.1111112, %v1388_v46 }
 0x132   : > { %v3166_v31 = vmul.f32 1.1111112, %v1389_v43  ;;  %1960 = vst [vmem:[%s2490_s18 + $0x318] sm:$0xff] %v1816_v56  ;;  %v954_v11 = vmul.u32 2654435761, %v810_v60  ;;  %v377_v62 = vor.u32 %v268_v14, %v2403_v2  ;;  %v378_v29 = vor.u32 %v268_v14, %v2410_v5  ;;  %v1394_v47 = vld [vmem:[%s2445_s13 + $0x368] sm:$0xff] }
 0x133   : > { %v379_v41 = vor.u32 %v268_v14, %v2413_v6  ;;  %vm1097_vm4 = vcmp.ge.u32.totalorder %v953_v59, 429496730  ;;  %v380_v18 = vor.u32 %v268_v14, %v2416_v7  ;;  %v1534_v50 = vmul.f32 1.1111112, %v1390_v17 }
 0x134   : > { %v381_v4 = vor.u32 %v268_v14, %v2419_v8  ;;  %v1673_v24 = vsel %vm1097_vm4, %v1529_v35, 0.0  ;;  %vm1098_vm5 = vcmp.ge.u32.totalorder %v954_v11, 429496730  ;;  %v523_v16 = vadd.s32 %v2451_v23, %v377_v62 }
 0x135   : > { %v524_v0 = vadd.s32 %v2451_v23, %v378_v29  ;;  %v1817_v27 = vadd.f32 %v1673_v24, %v1241_v15  ;;  %v1674_v28 = vsel %vm1098_vm5, %v1530_v25, 0.0  ;;  %v525_v37 = vadd.s32 %v2451_v23, %v379_v41  ;;  %v1243_v25 = vld [vmem:[%s2393_s10 + $0x330] sm:$0xff] }
 0x136   : > { %v526_v34 = vadd.s32 %v2451_v23, %v380_v18  ;;  %v1818_v10 = vadd.f32 %v1674_v28, %v1242_v19  ;;  %v667_v58 = vshrl.u32 %v523_v16, 16  ;;  %v527_v35 = vadd.s32 %v2451_v23, %v381_v4  ;;  %v1247_v29 = vld [vmem:[%s2393_s10 + $0x350] sm:$0xff]  ;;  %v1396_v19 = vld [vmem:[%s2445_s13 + $0x378] sm:$0xff] }
 0x137   : > { %v668_v39 = vshrl.u32 %v524_v0, 16  ;;  %1961 = vst [vmem:[%s2490_s18 + $0x320] sm:$0xff] %v1817_v27  ;;  %v669_v63 = vshrl.u32 %v525_v37, 16  ;;  %v1535_v42 = vmul.f32 1.1111112, %v1391_v22  ;;  %v382_v30 = vor.u32 %v268_v14, %v2422_v9  ;;  %v1395_v41 = vld [vmem:[%s2445_s13 + $0x370] sm:$0xff] }
 0x138   : > { %v670_v61 = vshrl.u32 %v526_v34, 16  ;;  %1962 = vst [vmem:[%s2490_s18 + $0x328] sm:$0xff] %v1818_v10  ;;  %v811_v45 = vxor.u32 %v667_v58, %v523_v16  ;;  %v671_v44 = vshrl.u32 %v527_v35, 16  ;;  %v213_v40 = vadd.s32 144, %v2401_v1 }
 0x139   : > { %v812_v57 = vxor.u32 %v668_v39, %v524_v0  ;;  %v813_v52 = vxor.u32 %v669_v63, %v525_v37  ;;  %v528_v13 = vadd.s32 %v2451_v23, %v382_v30  ;;  %v1536_v33 = vmul.f32 1.1111112, %v1392_v36  ;;  %v1397_v0 = vld [vmem:[%s2445_s13 + $0x380] sm:$0xff]  ;;  %v1248_v37 = vld [vmem:[%s2393_s10 + $0x358] sm:$0xff] }
 0x13a   : > { %v814_v49 = vxor.u32 %v670_v61, %v526_v34  ;;  %v955_v32 = vmul.u32 2654435761, %v811_v45  ;;  %v815_v46 = vxor.u32 %v671_v44, %v527_v35  ;;  %v3193_v43 = vmul.f32 1.1111112, %v1393_v26  ;;  %v1398_v45 = vld [vmem:[%s2445_s13 + $0x388] sm:$0xff] }
 0x13b   : > { %v956_v54 = vmul.u32 2654435761, %v812_v57  ;;  %v957_v51 = vmul.u32 2654435761, %v813_v52  ;;  %v672_v21 = vshrl.u32 %v528_v13, 16  ;;  %v238_v60 = vadd.s32 %v2405_v3, %v213_v40 }
 0x13c   : > { %v958_v53 = vmul.u32 2654435761, %v814_v49  ;;  %vm1099_vm6 = vcmp.ge.u32.totalorder %v955_v32, 429496730  ;;  %v959_v56 = vmul.u32 2654435761, %v815_v46 }
 0x13d   : > { %vm1100_vm7 = vcmp.ge.u32.totalorder %v956_v54, 429496730  ;;  %v1675_v14 = vsel %vm1099_vm6, %v3159_v12, 0.0  ;;  %vm1101_vm8 = vcmp.ge.u32.totalorder %v957_v51, 429496730  ;;  %v816_v12 = vxor.u32 %v672_v21, %v528_v13  ;;  %v1400_v46 = vld [vmem:[%s2445_s13 + $0x398] sm:$0xff] }
 0x13e   : > { %v1676_v17 = vsel %vm1100_vm7, %v3164_v55, 0.0  ;;  %vm1102_vm9 = vcmp.ge.u32.totalorder %v958_v53, 429496730  ;;  %v1819_v59 = vadd.f32 %v1675_v14, %v1243_v25  ;;  %v1677_v11 = vsel %vm1101_vm8, %v3166_v31, 0.0 }
 0x13f   : > { %v1820_v15 = vadd.f32 %v1676_v17, %v1244_v20  ;;  %v1678_v62 = vsel %vm1102_vm9, %v1534_v50, 0.0  ;;  %v1821_v18 = vadd.f32 %v1677_v11, %v1245_v38  ;;  %vm1103_vm10 = vcmp.ge.u32.totalorder %v959_v56, 429496730  ;;  %v1249_v56 = vld [vmem:[%s2393_s10 + $0x360] sm:$0xff] }
 0x140   : > { %v1822_v4 = vadd.f32 %v1678_v62, %v1246_v48  ;;  %1963 = vst [vmem:[%s2490_s18 + $0x330] sm:$0xff] %v1819_v59  ;;  %v1679_v55 = vsel %vm1103_vm10, %v1535_v42, 0.0  ;;  %v269_v24 = vshll.u32 %v238_v60, 10  ;;  %v3205_v16 = vmul.f32 1.1111112, %v1394_v47  ;;  %v1250_v60 = vld [vmem:[%s2393_s10 + $0x368] sm:$0xff] }
 0x141   : > { %1964 = vst [vmem:[%s2490_s18 + $0x338] sm:$0xff] %v1820_v15  ;;  %v214_v31 = vadd.s32 152, %v2401_v1  ;;  %1965 = vst [vmem:[%s2490_s18 + $0x340] sm:$0xff] %v1821_v18  ;;  %v1823_v50 = vadd.f32 %v1679_v55, %v1247_v29  ;;  %v960_v22 = vmul.u32 2654435761, %v816_v12  ;;  %v1251_v18 = vld [vmem:[%s2393_s10 + $0x370] sm:$0xff] }
 0x142   : > { %1966 = vst [vmem:[%s2490_s18 + $0x348] sm:$0xff] %v1822_v4  ;;  %v3211_v27 = vmul.f32 1.1111112, %v1395_v41  ;;  %v3213_v28 = vmul.f32 1.1111112, %v1396_v19  ;;  %v383_v34 = vor.u32 %v269_v24, %v2403_v2  ;;  %v384_v10 = vor.u32 %v269_v24, %v2410_v5  ;;  %v1252_v12 = vld [vmem:[%s2393_s10 + $0x378] sm:$0xff] }
 0x143   : > { %v385_v58 = vor.u32 %v269_v24, %v2413_v6  ;;  %v386_v39 = vor.u32 %v269_v24, %v2416_v7  ;;  %1967 = vst [vmem:[%s2490_s18 + $0x350] sm:$0xff] %v1823_v50  ;;  %vm1104_vm11 = vcmp.ge.u32.totalorder %v960_v22, 429496730  ;;  %v387_v35 = vor.u32 %v269_v24, %v2419_v8 }
 0x144   : > { %v3222_v36 = vmul.f32 1.1111112, %v1397_v0  ;;  %v388_v63 = vor.u32 %v269_v24, %v2422_v9  ;;  %v1680_v61 = vsel %vm1104_vm11, %v1536_v33, 0.0  ;;  %v529_v42 = vadd.s32 %v2451_v23, %v383_v34  ;;  %v1399_v33 = vld [vmem:[%s2445_s13 + $0x390] sm:$0xff] }
 0x145   : > { %v530_v30 = vadd.s32 %v2451_v23, %v384_v10  ;;  %v531_v26 = vadd.s32 %v2451_v23, %v385_v58  ;;  %v1824_v57 = vadd.f32 %v1680_v61, %v1248_v37  ;;  %v532_v44 = vadd.s32 %v2451_v23, %v386_v39  ;;  %v1253_v39 = vld [vmem:[%s2393_s10 + $0x380] sm:$0xff] }
 0x146   : > { %v533_v40 = vadd.s32 %v2451_v23, %v387_v35  ;;  %v534_v25 = vadd.s32 %v2451_v23, %v388_v63  ;;  %v673_v20 = vshrl.u32 %v529_v42, 16  ;;  %v239_v13 = vadd.s32 %v2405_v3, %v214_v31  ;;  %v1401_v35 = vld [vmem:[%s2445_s13 + $0x3a0] sm:$0xff] }
 0x147   : > { %v674_v52 = vshrl.u32 %v530_v30, 16  ;;  %v675_v49 = vshrl.u32 %v531_v26, 16  ;;  %1968 = vst [vmem:[%s2490_s18 + $0x358] sm:$0xff] %v1824_v57  ;;  %v676_v32 = vshrl.u32 %v532_v44, 16  ;;  %v1542_v48 = vmul.f32 1.1111112, %v1398_v45 }
 0x148   : > { %v677_v54 = vshrl.u32 %v533_v40, 16  ;;  %v678_v38 = vshrl.u32 %v534_v25, 16  ;;  %v817_v51 = vxor.u32 %v673_v20, %v529_v42  ;;  %v3236_v47 = vshll.u32 %v239_v13, 10  ;;  %v1254_v42 = vld [vmem:[%s2393_s10 + $0x388] sm:$0xff] }
 0x149   : > { %v818_v53 = vxor.u32 %v674_v52, %v530_v30  ;;  %v819_v21 = vxor.u32 %v675_v49, %v531_v26  ;;  %v820_v14 = vxor.u32 %v676_v32, %v532_v44  ;;  %v3240_v15 = vmul.f32 1.1111112, %v1399_v33  ;;  %v1403_v52 = vld [vmem:[%s2445_s13 + $0x3b0] sm:$0xff] }
 0x14a   : > { %v821_v17 = vxor.u32 %v677_v54, %v533_v40  ;;  %v822_v59 = vxor.u32 %v678_v38, %v534_v25  ;;  %v961_v11 = vmul.u32 2654435761, %v817_v51  ;;  %v389_v29 = vor.u32 %v3236_v47, %v2403_v2  ;;  %v1255_v51 = vld [vmem:[%s2393_s10 + $0x390] sm:$0xff] }
 0x14b   : > { %v962_v62 = vmul.u32 2654435761, %v818_v53  ;;  %v3244_v41 = vmul.f32 1.1111112, %v1400_v46  ;;  %v963_v19 = vmul.u32 2654435761, %v819_v21  ;;  %v390_v55 = vor.u32 %v3236_v47, %v2410_v5 }
 0x14c   : > { %v964_v4 = vmul.u32 2654435761, %v820_v14  ;;  %v391_v24 = vor.u32 %v3236_v47, %v2413_v6  ;;  %vm1105_vm12 = vcmp.ge.u32.totalorder %v961_v11, 429496730  ;;  %v965_v0 = vmul.u32 2654435761, %v821_v17 }
 0x14d   : > { %vm1106_vm13 = vcmp.ge.u32.totalorder %v962_v62, 429496730  ;;  %v535_v31 = vadd.s32 %v2451_v23, %v389_v29  ;;  %v1681_v50 = vsel %vm1105_vm12, %v3193_v43, 0.0  ;;  %vm1107_vm14 = vcmp.ge.u32.totalorder %v963_v19, 429496730  ;;  %v1256_v62 = vld [vmem:[%s2393_s10 + $0x398] sm:$0xff] }
 0x14e   : > { %v1682_v22 = vsel %vm1106_vm13, %v3205_v16, 0.0  ;;  %vm1108_vm15 = vcmp.ge.u32.totalorder %v964_v4, 429496730  ;;  %v1825_v37 = vadd.f32 %v1681_v50, %v1249_v56  ;;  %v1683_v10 = vsel %vm1107_vm14, %v3211_v27, 0.0  ;;  %v1257_v29 = vld [vmem:[%s2393_s10 + $0x3a0] sm:$0xff] }
 0x14f   : > { %v1826_v34 = vadd.f32 %v1682_v22, %v1250_v60  ;;  %v1684_v58 = vsel %vm1108_vm15, %v3213_v28, 0.0  ;;  %v1827_v63 = vadd.f32 %v1683_v10, %v1251_v18  ;;  %vm1109_vm0 = vcmp.ge.u32.totalorder %v965_v0, 429496730  ;;  %v1402_v28 = vld [vmem:[%s2445_s13 + $0x3a8] sm:$0xff] }
 0x150   : > { %v1828_v61 = vadd.f32 %v1684_v58, %v1252_v12  ;;  %v966_v43 = vmul.u32 2654435761, %v822_v59  ;;  %1969 = vst [vmem:[%s2490_s18 + $0x360] sm:$0xff] %v1825_v37  ;;  %v1685_v16 = vsel %vm1109_vm0, %v3222_v36, 0.0  ;;  %v679_v30 = vshrl.u32 %v535_v31, 16  ;;  %v1258_v37 = vld [vmem:[%s2393_s10 + $0x3a8] sm:$0xff] }
 0x151   : > { %1970 = vst [vmem:[%s2490_s18 + $0x368] sm:$0xff] %v1826_v34  ;;  %v536_v27 = vadd.s32 %v2451_v23, %v390_v55  ;;  %v537_v26 = vadd.s32 %v2451_v23, %v391_v24  ;;  %1971 = vst [vmem:[%s2490_s18 + $0x370] sm:$0xff] %v1827_v63  ;;  %v1829_v45 = vadd.f32 %v1685_v16, %v1253_v39  ;;  %v1545_v57 = vmul.f32 1.1111112, %v1401_v35  ;;  %v1404_v55 = vld [vmem:[%s2445_s13 + $0x3b8] sm:$0xff]  ;;  %v1405_v58 = vld [vmem:[%s2445_s13 + $0x3c0] sm:$0xff] }
 0x152   : > { %1972 = vst [vmem:[%s2490_s18 + $0x378] sm:$0xff] %v1828_v61  ;;  %vm1110_vm1 = vcmp.ge.u32.totalorder %v966_v43, 429496730  ;;  %v392_v44 = vor.u32 %v3236_v47, %v2416_v7  ;;  %v823_v40 = vxor.u32 %v679_v30, %v535_v31  ;;  %v1546_v33 = vmul.f32 1.1111112, %v1402_v28  ;;  %v1259_v63 = vld [vmem:[%s2393_s10 + $0x3b0] sm:$0xff] }
 0x153   : > { %v1686_v36 = vsel %vm1110_vm1, %v1542_v48, 0.0  ;;  %v680_v25 = vshrl.u32 %v536_v27, 16  ;;  %v681_v20 = vshrl.u32 %v537_v26, 16  ;;  %1973 = vst [vmem:[%s2490_s18 + $0x380] sm:$0xff] %v1829_v45  ;;  %v393_v32 = vor.u32 %v3236_v47, %v2419_v8 }
 0x154   : > { %v1830_v49 = vadd.f32 %v1686_v36, %v1254_v42  ;;  %v538_v13 = vadd.s32 %v2451_v23, %v392_v44  ;;  %v967_v54 = vmul.u32 2654435761, %v823_v40  ;;  %v394_v48 = vor.u32 %v3236_v47, %v2422_v9  ;;  %v1406_v42 = vld [vmem:[%s2445_s13 + $0x3c8] sm:$0xff]  ;;  %v1407_v36 = vld [vmem:[%s2445_s13 + $0x3d0] sm:$0xff]  ;;  %v1408_v40 = vld [vmem:[%s2445_s13 + $0x3d8] sm:$0xff] }
 0x155   : > { %v824_v38 = vxor.u32 %v680_v25, %v536_v27  ;;  %v825_v46 = vxor.u32 %v681_v20, %v537_v26  ;;  %v539_v21 = vadd.s32 %v2451_v23, %v393_v32  ;;  %v1547_v56 = vmul.f32 1.1111112, %v1403_v52  ;;  %v1260_v27 = vld [vmem:[%s2393_s10 + $0x3b8] sm:$0xff] }
 0x156   : > { %1974 = vst [vmem:[%s2490_s18 + $0x388] sm:$0xff] %v1830_v49  ;;  %v682_v53 = vshrl.u32 %v538_v13, 16  ;;  %v215_v60 = vadd.s32 160, %v2401_v1  ;;  %vm1111_vm2 = vcmp.ge.u32.totalorder %v967_v54, 429496730  ;;  %v540_v59 = vadd.s32 %v2451_v23, %v394_v48 }
 0x157   : > { %v968_v14 = vmul.u32 2654435761, %v824_v38  ;;  %v969_v17 = vmul.u32 2654435761, %v825_v46  ;;  %v1687_v11 = vsel %vm1111_vm2, %v3240_v15, 0.0  ;;  %v683_v19 = vshrl.u32 %v539_v21, 16 }
 0x158   : > { %v826_v47 = vxor.u32 %v682_v53, %v538_v13  ;;  %v240_v18 = vadd.s32 %v2405_v3, %v215_v60  ;;  %v1831_v4 = vadd.f32 %v1687_v11, %v1255_v51  ;;  %v684_v12 = vshrl.u32 %v540_v59, 16  ;;  %v1409_v38 = vld [vmem:[%s2445_s13 + $0x3e0] sm:$0xff] }
 0x159   : > { %vm1112_vm3 = vcmp.ge.u32.totalorder %v968_v14, 429496730  ;;  %vm1113_vm4 = vcmp.ge.u32.totalorder %v969_v17, 429496730  ;;  %v827_v31 = vxor.u32 %v683_v19, %v539_v21  ;;  %v1548_v35 = vmul.f32 1.1111112, %v1404_v55 }
 0x15a   : > { %v1688_v24 = vsel %vm1112_vm3, %v3244_v41, 0.0  ;;  %v1689_v0 = vsel %vm1113_vm4, %v1545_v57, 0.0  ;;  %v970_v15 = vmul.u32 2654435761, %v826_v47  ;;  %1975 = vst [vmem:[%s2490_s18 + $0x390] sm:$0xff] %v1831_v4  ;;  %v828_v34 = vxor.u32 %v684_v12, %v540_v59  ;;  %v1410_v17 = vld [vmem:[%s2445_s13 + $0x3e8] sm:$0xff] }
 0x15b   : > { %v1832_v50 = vadd.f32 %v1688_v24, %v1256_v62  ;;  %v1833_v22 = vadd.f32 %v1689_v0, %v1257_v29  ;;  %v271_v10 = vshll.u32 %v240_v18, 10  ;;  %v971_v39 = vmul.u32 2654435761, %v827_v31  ;;  %v1261_v19 = vld [vmem:[%s2393_s10 + $0x3c0] sm:$0xff]  ;;  %v1262_v55 = vld [vmem:[%s2393_s10 + $0x3c8] sm:$0xff] }
 0x15c   : > { %vm1114_vm5 = vcmp.ge.u32.totalorder %v970_v15, 429496730  ;;  %v972_v61 = vmul.u32 2654435761, %v828_v34  ;;  %v1549_v26 = vmul.f32 1.1111112, %v1405_v58 }
 0x15d   : > { %1976 = vst [vmem:[%s2490_s18 + $0x398] sm:$0xff] %v1832_v50  ;;  %1977 = vst [vmem:[%s2490_s18 + $0x3a0] sm:$0xff] %v1833_v22  ;;  %v1690_v41 = vsel %vm1114_vm5, %v1546_v33, 0.0  ;;  %v395_v43 = vor.u32 %v271_v10, %v2403_v2  ;;  %v396_v16 = vor.u32 %v271_v10, %v2410_v5  ;;  %vm1115_vm6 = vcmp.ge.u32.totalorder %v971_v39, 429496730  ;;  %v1263_v50 = vld [vmem:[%s2393_s10 + $0x3d0] sm:$0xff] }
 0x15e   : > { %v1834_v30 = vadd.f32 %v1690_v41, %v1258_v37  ;;  %v397_v28 = vor.u32 %v271_v10, %v2413_v6  ;;  %v1691_v45 = vsel %vm1115_vm6, %v1547_v56, 0.0  ;;  %vm1116_vm7 = vcmp.ge.u32.totalorder %v972_v61, 429496730  ;;  %v1411_v39 = vld [vmem:[%s2445_s13 + $0x3f0] sm:$0xff] }
 0x15f   : > { %v541_v57 = vadd.s32 %v2451_v23, %v395_v43  ;;  %v542_v44 = vadd.s32 %v2451_v23, %v396_v16  ;;  %v1835_v25 = vadd.f32 %v1691_v45, %v1259_v63  ;;  %v1692_v20 = vsel %vm1116_vm7, %v1548_v35, 0.0  ;;  %v1412_v35 = vld [vmem:[%s2445_s13 + $0x3f8] sm:$0xff] }
 0x160   : > { %1978 = vst [vmem:[%s2490_s18 + $0x3a8] sm:$0xff] %v1834_v30  ;;  %v1550_v52 = vmul.f32 1.1111112, %v1406_v42  ;;  %v543_v49 = vadd.s32 %v2451_v23, %v397_v28  ;;  %v1836_v13 = vadd.f32 %v1692_v20, %v1260_v27  ;;  %v398_v54 = vor.u32 %v271_v10, %v2416_v7  ;;  %v1264_v42 = vld [vmem:[%s2393_s10 + $0x3d8] sm:$0xff]  ;;  %v1265_v27 = vld [vmem:[%s2393_s10 + $0x3e0] sm:$0xff] }
 0x161   : > { %v685_v33 = vshrl.u32 %v541_v57, 16  ;;  %v686_v32 = vshrl.u32 %v542_v44, 16  ;;  %1979 = vst [vmem:[%s2490_s18 + $0x3b0] sm:$0xff] %v1835_v25  ;;  %v1551_v48 = vmul.f32 1.1111112, %v1407_v36  ;;  %v399_v53 = vor.u32 %v271_v10, %v2419_v8  ;;  %v1413_v25 = vld [vmem:[%s2445_s13 + $0x400] sm:$0xff] }
 0x162   : > { %v687_v46 = vshrl.u32 %v543_v49, 16  ;;  %v1552_v51 = vmul.f32 1.1111112, %v1408_v40  ;;  %1980 = vst [vmem:[%s2490_s18 + $0x3b8] sm:$0xff] %v1836_v13  ;;  %v544_v60 = vadd.s32 %v2451_v23, %v398_v54  ;;  %v400_v14 = vor.u32 %v271_v10, %v2422_v9 }
 0x163   : > { %v829_v21 = vxor.u32 %v685_v33, %v541_v57  ;;  %v830_v56 = vxor.u32 %v686_v32, %v542_v44  ;;  %v545_v11 = vadd.s32 %v2451_v23, %v399_v53  ;;  %v1553_v62 = vmul.f32 1.1111112, %v1409_v38 }
 0x164   : > { %v831_v59 = vxor.u32 %v687_v46, %v543_v49  ;;  %v216_v29 = vadd.s32 168, %v2401_v1  ;;  %v688_v4 = vshrl.u32 %v544_v60, 16  ;;  %v546_v12 = vadd.s32 %v2451_v23, %v400_v14  ;;  %v1266_v49 = vld [vmem:[%s2393_s10 + $0x3e8] sm:$0xff] }
 0x165   : > { %v973_v47 = vmul.u32 2654435761, %v829_v21  ;;  %v974_v18 = vmul.u32 2654435761, %v830_v56  ;;  %v689_v0 = vshrl.u32 %v545_v11, 16  ;;  %v1414_v46 = vld [vmem:[%s2445_s13 + $0x408] sm:$0xff] }
 0x166   : > { %v975_v24 = vmul.u32 2654435761, %v831_v59  ;;  %v1554_v15 = vmul.f32 1.1111112, %v1410_v17  ;;  %v241_v31 = vadd.s32 %v2405_v3, %v216_v29  ;;  %v832_v22 = vxor.u32 %v688_v4, %v544_v60  ;;  %v1415_v56 = vld [vmem:[%s2445_s13 + $0x410] sm:$0xff] }
 0x167   : > { %vm1117_vm8 = vcmp.ge.u32.totalorder %v973_v47, 429496730  ;;  %vm1118_vm9 = vcmp.ge.u32.totalorder %v974_v18, 429496730  ;;  %v690_v37 = vshrl.u32 %v546_v12, 16  ;;  %v833_v58 = vxor.u32 %v689_v0, %v545_v11 }
 0x168   : > { %v1693_v34 = vsel %vm1117_vm8, %v1549_v26, 0.0  ;;  %v1694_v10 = vsel %vm1118_vm9, %v1550_v52, 0.0  ;;  %vm1119_vm10 = vcmp.ge.u32.totalorder %v975_v24, 429496730  ;;  %v976_v43 = vmul.u32 2654435761, %v832_v22 }
 0x169   : > { %v1837_v41 = vadd.f32 %v1693_v34, %v1261_v19  ;;  %v1838_v63 = vadd.f32 %v1694_v10, %v1262_v55  ;;  %v1695_v61 = vsel %vm1119_vm10, %v1551_v48, 0.0  ;;  %v977_v30 = vmul.u32 2654435761, %v833_v58  ;;  %v1416_v19 = vld [vmem:[%s2445_s13 + $0x418] sm:$0xff]  ;;  %v1267_v10 = vld [vmem:[%s2393_s10 + $0x3f0] sm:$0xff] }
 0x16a   : > { %v1839_v16 = vadd.f32 %v1695_v61, %v1263_v50  ;;  %v834_v28 = vxor.u32 %v690_v37, %v546_v12  ;;  %v272_v26 = vshll.u32 %v241_v31, 10  ;;  %vm1120_vm11 = vcmp.ge.u32.totalorder %v976_v43, 429496730 }
 0x16b   : > { %1981 = vst [vmem:[%s2490_s18 + $0x3c0] sm:$0xff] %v1837_v41  ;;  %1982 = vst [vmem:[%s2490_s18 + $0x3c8] sm:$0xff] %v1838_v63  ;;  %v3326_v45 = vmul.f32 1.1111112, %v1411_v39  ;;  %v3328_v57 = vmul.f32 1.1111112, %v1412_v35 }
 0x16c   : > { %1983 = vst [vmem:[%s2490_s18 + $0x3d0] sm:$0xff] %v1839_v16  ;;  %v1696_v44 = vsel %vm1120_vm11, %v1552_v51, 0.0  ;;  %vm1121_vm12 = vcmp.ge.u32.totalorder %v977_v30, 429496730  ;;  %v978_v36 = vmul.u32 2654435761, %v834_v28  ;;  %v401_v40 = vor.u32 %v272_v26, %v2403_v2 }
 0x16d   : > { %v1840_v20 = vadd.f32 %v1696_v44, %v1264_v42  ;;  %v1697_v52 = vsel %vm1121_vm12, %v1553_v62, 0.0  ;;  %v402_v13 = vor.u32 %v272_v26, %v2410_v5  ;;  %v403_v33 = vor.u32 %v272_v26, %v2413_v6  ;;  %v1268_v41 = vld [vmem:[%s2393_s10 + $0x3f8] sm:$0xff]  ;;  %v1269_v63 = vld [vmem:[%s2393_s10 + $0x400] sm:$0xff]  ;;  %v1270_v30 = vld [vmem:[%s2393_s10 + $0x408] sm:$0xff] }
 0x16e   : > { %v1841_v32 = vadd.f32 %v1697_v52, %v1265_v27  ;;  %vm1122_vm13 = vcmp.ge.u32.totalorder %v978_v36, 429496730  ;;  %v547_v54 = vadd.s32 %v2451_v23, %v401_v40  ;;  %v404_v38 = vor.u32 %v272_v26, %v2416_v7  ;;  %v1417_v36 = vld [vmem:[%s2445_s13 + $0x420] sm:$0xff]  ;;  %v1418_v40 = vld [vmem:[%s2445_s13 + $0x428] sm:$0xff] }
 0x16f   : > { %1984 = vst [vmem:[%s2490_s18 + $0x3d8] sm:$0xff] %v1840_v20  ;;  %v1698_v48 = vsel %vm1122_vm13, %v1554_v15, 0.0  ;;  %v548_v51 = vadd.s32 %v2451_v23, %v402_v13  ;;  %v549_v53 = vadd.s32 %v2451_v23, %v403_v33  ;;  %v1557_v21 = vmul.f32 1.1111112, %v1413_v25  ;;  %v1271_v13 = vld [vmem:[%s2393_s10 + $0x410] sm:$0xff] }
 0x170   : > { %1985 = vst [vmem:[%s2490_s18 + $0x3e0] sm:$0xff] %v1841_v32  ;;  %v1842_v60 = vadd.f32 %v1698_v48, %v1266_v49  ;;  %v691_v14 = vshrl.u32 %v547_v54, 16  ;;  %v550_v17 = vadd.s32 %v2451_v23, %v404_v38  ;;  %v405_v59 = vor.u32 %v272_v26, %v2419_v8  ;;  %v1272_v32 = vld [vmem:[%s2393_s10 + $0x418] sm:$0xff] }
 0x171   : > { %v692_v11 = vshrl.u32 %v548_v51, 16  ;;  %v693_v62 = vshrl.u32 %v549_v53, 16  ;;  %v1558_v29 = vmul.f32 1.1111112, %v1414_v46  ;;  %v406_v47 = vor.u32 %v272_v26, %v2422_v9 }
 0x172   : > { %1986 = vst [vmem:[%s2490_s18 + $0x3e8] sm:$0xff] %v1842_v60  ;;  %v835_v18 = vxor.u32 %v691_v14, %v547_v54  ;;  %v694_v4 = vshrl.u32 %v550_v17, 16  ;;  %v551_v12 = vadd.s32 %v2451_v23, %v405_v59  ;;  %v1559_v55 = vmul.f32 1.1111112, %v1415_v56 }
 0x173   : > { %v836_v24 = vxor.u32 %v692_v11, %v548_v51  ;;  %v837_v0 = vxor.u32 %v693_v62, %v549_v53  ;;  %v552_v15 = vadd.s32 %v2451_v23, %v406_v47  ;;  %v217_v31 = vadd.s32 176, %v2401_v1  ;;  %v1419_v53 = vld [vmem:[%s2445_s13 + $0x430] sm:$0xff]  ;;  %v1420_v62 = vld [vmem:[%s2445_s13 + $0x438] sm:$0xff] }
 0x174   : > { %v979_v50 = vmul.u32 2654435761, %v835_v18  ;;  %v838_v22 = vxor.u32 %v694_v4, %v550_v17  ;;  %v695_v37 = vshrl.u32 %v551_v12, 16  ;;  %v1560_v34 = vmul.f32 1.1111112, %v1416_v19 }
 0x175   : > { %v980_v58 = vmul.u32 2654435761, %v836_v24  ;;  %v981_v39 = vmul.u32 2654435761, %v837_v0  ;;  %v696_v35 = vshrl.u32 %v552_v15, 16  ;;  %v242_v16 = vadd.s32 %v2405_v3, %v217_v31  ;;  %v1421_v0 = vld [vmem:[%s2445_s13 + $0x440] sm:$0xff] }
 0x176   : > { %vm1123_vm14 = vcmp.ge.u32.totalorder %v979_v50, 429496730  ;;  %v982_v61 = vmul.u32 2654435761, %v838_v22  ;;  %v839_v43 = vxor.u32 %v695_v37, %v551_v12  ;;  %v1562_v38 = vmul.f32 1.1111112, %v1418_v40 }
 0x177   : > { %v1699_v42 = vsel %vm1123_vm14, %v3326_v45, 0.0  ;;  %vm1124_vm15 = vcmp.ge.u32.totalorder %v980_v58, 429496730  ;;  %vm1125_vm0 = vcmp.ge.u32.totalorder %v981_v39, 429496730  ;;  %v840_v27 = vxor.u32 %v696_v35, %v552_v15  ;;  %v1422_v39 = vld [vmem:[%s2445_s13 + $0x448] sm:$0xff] }
 0x178   : > { %v1843_v28 = vadd.f32 %v1699_v42, %v1267_v10  ;;  %v1700_v26 = vsel %vm1124_vm15, %v3328_v57, 0.0  ;;  %v1701_v44 = vsel %vm1125_vm0, %v1557_v21, 0.0  ;;  %vm1126_vm1 = vcmp.ge.u32.totalorder %v982_v61, 429496730 }
 0x179   : > { %v1844_v25 = vadd.f32 %v1700_v26, %v1268_v41  ;;  %v1845_v20 = vadd.f32 %v1701_v44, %v1269_v63  ;;  %v1702_v52 = vsel %vm1126_vm1, %v1558_v29, 0.0  ;;  %v983_v45 = vmul.u32 2654435761, %v839_v43  ;;  %v1273_v41 = vld [vmem:[%s2393_s10 + $0x420] sm:$0xff]  ;;  %v1274_v63 = vld [vmem:[%s2393_s10 + $0x428] sm:$0xff] }
 0x17a   : > { %1987 = vst [vmem:[%s2490_s18 + $0x3f0] sm:$0xff] %v1843_v28  ;;  %v1846_v49 = vadd.f32 %v1702_v52, %v1270_v30  ;;  %v984_v33 = vmul.u32 2654435761, %v840_v27  ;;  %v273_v54 = vshll.u32 %v242_v16, 10  ;;  %v1561_v57 = vmul.f32 1.1111112, %v1417_v36 }
 0x17b   : > { %1988 = vst [vmem:[%s2490_s18 + $0x3f8] sm:$0xff] %v1844_v25  ;;  %1989 = vst [vmem:[%s2490_s18 + $0x400] sm:$0xff] %v1845_v20  ;;  %vm1127_vm2 = vcmp.ge.u32.totalorder %v983_v45, 429496730  ;;  %v1563_v19 = vmul.f32 1.1111112, %v1419_v53 }
 0x17c   : > { %1990 = vst [vmem:[%s2490_s18 + $0x408] sm:$0xff] %v1846_v49  ;;  %v1703_v46 = vsel %vm1127_vm2, %v1559_v55, 0.0  ;;  %vm1128_vm3 = vcmp.ge.u32.totalorder %v984_v33, 429496730  ;;  %v407_v48 = vor.u32 %v273_v54, %v2403_v2  ;;  %v408_v51 = vor.u32 %v273_v54, %v2410_v5  ;;  %v1275_v27 = vld [vmem:[%s2393_s10 + $0x430] sm:$0xff]  ;;  %v1276_v28 = vld [vmem:[%s2393_s10 + $0x438] sm:$0xff] }
 0x17d   : > { %v1847_v21 = vadd.f32 %v1703_v46, %v1271_v13  ;;  %v1704_v56 = vsel %vm1128_vm3, %v1560_v34, 0.0  ;;  %v409_v60 = vor.u32 %v273_v54, %v2413_v6  ;;  %v410_v14 = vor.u32 %v273_v54, %v2416_v7  ;;  %v1277_v46 = vld [vmem:[%s2393_s10 + $0x440] sm:$0xff] }
 0x17e   : > { %v1848_v17 = vadd.f32 %v1704_v56, %v1272_v32  ;;  %v553_v59 = vadd.s32 %v2451_v23, %v407_v48  ;;  %v554_v11 = vadd.s32 %v2451_v23, %v408_v51  ;;  %v411_v29 = vor.u32 %v273_v54, %v2419_v8 }
 0x17f   : > { %1991 = vst [vmem:[%s2490_s18 + $0x410] sm:$0xff] %v1847_v21  ;;  %v555_v47 = vadd.s32 %v2451_v23, %v409_v60  ;;  %v556_v18 = vadd.s32 %v2451_v23, %v410_v14  ;;  %v412_v4 = vor.u32 %v273_v54, %v2422_v9  ;;  %v218_v15 = vadd.s32 184, %v2401_v1 }
 0x180   : > { %1992 = vst [vmem:[%s2490_s18 + $0x418] sm:$0xff] %v1848_v17  ;;  %v697_v12 = vshrl.u32 %v553_v59, 16  ;;  %v698_v55 = vshrl.u32 %v554_v11, 16  ;;  %v557_v24 = vadd.s32 %v2451_v23, %v411_v29  ;;  %v1564_v22 = vmul.f32 1.1111112, %v1420_v62  ;;  %v1424_v29 = vld [vmem:[%s2445_s13 + $0x458] sm:$0xff] }
 0x181   : > { %v699_v31 = vshrl.u32 %v555_v47, 16  ;;  %v700_v50 = vshrl.u32 %v556_v18, 16  ;;  %v558_v37 = vadd.s32 %v2451_v23, %v412_v4  ;;  %v243_v35 = vadd.s32 %v2405_v3, %v218_v15 }
 0x182   : > { %v841_v34 = vxor.u32 %v697_v12, %v553_v59  ;;  %v842_v10 = vxor.u32 %v698_v55, %v554_v11  ;;  %v701_v58 = vshrl.u32 %v557_v24, 16  ;;  %v1565_v16 = vmul.f32 1.1111112, %v1421_v0  ;;  %v1423_v11 = vld [vmem:[%s2445_s13 + $0x450] sm:$0xff]  ;;  %v1425_v12 = vld [vmem:[%s2445_s13 + $0x460] sm:$0xff]  ;;  %v1426_v55 = vld [vmem:[%s2445_s13 + $0x468] sm:$0xff] }
 0x183   : > { %v843_v61 = vxor.u32 %v699_v31, %v555_v47  ;;  %v844_v43 = vxor.u32 %v700_v50, %v556_v18  ;;  %v702_v42 = vshrl.u32 %v558_v37, 16  ;;  %v274_v44 = vshll.u32 %v243_v35, 10 }
 0x184   : > { %v985_v1 = vmul.u32 2654435761, %v841_v34  ;;  %v986_v30 = vmul.u32 2654435761, %v842_v10  ;;  %v845_v26 = vxor.u32 %v701_v58, %v557_v24  ;;  %v1566_v20 = vmul.f32 1.1111112, %v1422_v39 }
 0x185   : > { %v987_v36 = vmul.u32 2654435761, %v843_v61  ;;  %v988_v40 = vmul.u32 2654435761, %v844_v43  ;;  %v846_v25 = vxor.u32 %v702_v42, %v558_v37  ;;  %v413_v52 = vor.u32 %v274_v44, %v2403_v2  ;;  %v1279_v37 = vld [vmem:[%s2393_s10 + $0x450] sm:$0xff]  ;;  %v1280_v58 = vld [vmem:[%s2393_s10 + $0x458] sm:$0xff] }
 0x186   : > { %vm1129_vm4 = vcmp.ge.u32.totalorder %v985_v1, 429496730  ;;  %vm1130_vm5 = vcmp.ge.u32.totalorder %v986_v30, 429496730  ;;  %v989_v3 = vmul.u32 2654435761, %v845_v26  ;;  %v414_v21 = vor.u32 %v274_v44, %v2410_v5 }
 0x187   : > { %v1705_v45 = vsel %vm1129_vm4, %v1561_v57, 0.0  ;;  %v1706_v49 = vsel %vm1130_vm5, %v1562_v38, 0.0  ;;  %vm1131_vm6 = vcmp.ge.u32.totalorder %v987_v36, 429496730  ;;  %vm1132_vm7 = vcmp.ge.u32.totalorder %v988_v40, 429496730 }
 0x188   : > { %v1849_v13 = vadd.f32 %v1705_v45, %v1273_v41  ;;  %v1850_v33 = vadd.f32 %v1706_v49, %v1274_v63  ;;  %v1707_v32 = vsel %vm1131_vm6, %v1563_v19, 0.0  ;;  %v1708_v54 = vsel %vm1132_vm7, %v1564_v22, 0.0  ;;  %v1278_v57 = vld [vmem:[%s2393_s10 + $0x448] sm:$0xff]  ;;  %v1281_v39 = vld [vmem:[%s2393_s10 + $0x460] sm:$0xff]  ;;  %v1427_v61 = vld [vmem:[%s2445_s13 + $0x470] sm:$0xff] }
 0x189   : > { %v1851_v48 = vadd.f32 %v1707_v32, %v1275_v27  ;;  %v1852_v51 = vadd.f32 %v1708_v54, %v1276_v28  ;;  %vm1133_vm8 = vcmp.ge.u32.totalorder %v989_v3, 429496730  ;;  %v990_v53 = vmul.u32 2654435761, %v846_v25  ;;  %v1282_v30 = vld [vmem:[%s2393_s10 + $0x468] sm:$0xff]  ;;  %v1283_v45 = vld [vmem:[%s2393_s10 + $0x470] sm:$0xff] }
 0x18a   : > { %1993 = vst [vmem:[%s2490_s18 + $0x420] sm:$0xff] %v1849_v13  ;;  %1994 = vst [vmem:[%s2490_s18 + $0x428] sm:$0xff] %v1850_v33  ;;  %v1709_v2 = vsel %vm1133_vm8, %v1565_v16, 0.0  ;;  %v559_v38 = vadd.s32 %v2451_v23, %v413_v52  ;;  %v415_v56 = vor.u32 %v274_v44, %v2413_v6  ;;  %v416_v14 = vor.u32 %v274_v44, %v2416_v7 }
 0x18b   : > { %1995 = vst [vmem:[%s2490_s18 + $0x430] sm:$0xff] %v1851_v48  ;;  %1996 = vst [vmem:[%s2490_s18 + $0x438] sm:$0xff] %v1852_v51  ;;  %v1853_v60 = vadd.f32 %v1709_v2, %v1277_v46  ;;  %vm1134_vm9 = vcmp.ge.u32.totalorder %v990_v53, 429496730  ;;  %v560_v62 = vadd.s32 %v2451_v23, %v414_v21  ;;  %v417_v19 = vor.u32 %v274_v44, %v2419_v8  ;;  %v1284_v48 = vld [vmem:[%s2393_s10 + $0x478] sm:$0xff]  ;;  %s2205_s10 = scalar_lea.vmem %s2204_s9, 36864 }
 0x18c   : > { %v1710_v17 = vsel %vm1134_vm9, %v1566_v20, 0.0  ;;  %v703_v59 = vshrl.u32 %v559_v38, 16  ;;  %v561_v47 = vadd.s32 %v2451_v23, %v415_v56  ;;  %v562_v6 = vadd.s32 %v2451_v23, %v416_v14  ;;  %p2207_p8 = scmp.lt.s32.totalorder %s2205_s10, %s2199_s30 }
 0x18d   : > { %1997 = vst [vmem:[%s2490_s18 + $0x440] sm:$0xff] %v1853_v60  ;;  %v1854_v5 = vadd.f32 %v1710_v17, %v1278_v57  ;;  %v704_v4 = vshrl.u32 %v560_v62, 16  ;;  %v418_v24 = vor.u32 %v274_v44, %v2422_v9  ;;  %v1567_v0 = vmul.f32 1.1111112, %v1423_v11 }
 0x18e   : > { %v847_v18 = vxor.u32 %v703_v59, %v559_v38  ;;  %v705_v7 = vshrl.u32 %v561_v47, 16  ;;  %v1568_v15 = vmul.f32 1.1111112, %v1424_v29  ;;  %v706_v31 = vshrl.u32 %v562_v6, 16  ;;  %p2208_p10 = por %p2207_p8, %p2206_p7 }
 0x18f   : > { %1998 = vst [vmem:[%s2490_s18 + $0x448] sm:$0xff] %v1854_v5  ;;  %v563_v50 = vadd.s32 %v2451_v23, %v417_v19  ;;  %v848_v8 = vxor.u32 %v704_v4, %v560_v62  ;;  %v564_v10 = vadd.s32 %v2451_v23, %v418_v24  ;;  %v1569_v35 = vmul.f32 1.1111112, %v1425_v12  ;;  %v1428_v23 = vld [vmem:[%s2445_s13 + $0x478] sm:$0xff] }
 0x190   : > { %v991_v22 = vmul.u32 2654435761, %v847_v18  ;;  %v849_v34 = vxor.u32 %v705_v7, %v561_v47  ;;  %v850_v41 = vxor.u32 %v706_v31, %v562_v6  ;;  %v1570_v9 = vmul.f32 1.1111112, %v1426_v55  ;;  %p2209_p1 = pnand %p2208_p10, %p2202_p5 }
 0x191   : > { %v707_v63 = vshrl.u32 %v563_v50, 16  ;;  %v992_v43 = vmul.u32 2654435761, %v848_v8  ;;  %v708_v28 = vshrl.u32 %v564_v10, 16  ;;  %v1571_v44 = vmul.f32 1.1111112, %v1427_v61 }
 0x192   : > { %vm1135_vm10 = vcmp.ge.u32.totalorder %v991_v22, 429496730  ;;  %v993_v16 = vmul.u32 2654435761, %v849_v34  ;;  %v994_v1 = vmul.u32 2654435761, %v850_v41 }
 0x193   : > { %v1711_v42 = vsel %vm1135_vm10, %v1567_v0, 0.0  ;;  %v851_v27 = vxor.u32 %v707_v63, %v563_v50  ;;  %vm1136_vm11 = vcmp.ge.u32.totalorder %v992_v43, 429496730  ;;  %v852_v49 = vxor.u32 %v708_v28, %v564_v10 }
 0x194   : > { %v1855_v26 = vadd.f32 %v1711_v42, %v1279_v37  ;;  %vm1137_vm12 = vcmp.ge.u32.totalorder %v993_v16, 429496730  ;;  %v1712_v36 = vsel %vm1136_vm11, %v1568_v15, 0.0  ;;  %vm1138_vm13 = vcmp.ge.u32.totalorder %v994_v1, 429496730 }
 0x195   : > { %v1713_v40 = vsel %vm1137_vm12, %v1569_v35, 0.0  ;;  %v995_v25 = vmul.u32 2654435761, %v851_v27  ;;  %v1856_v20 = vadd.f32 %v1712_v36, %v1280_v58  ;;  %v1714_v52 = vsel %vm1138_vm13, %v1570_v9, 0.0 }
 0x196   : > { %1999 = vst [vmem:[%s2490_s18 + $0x450] sm:$0xff] %v1855_v26  ;;  %v1857_v3 = vadd.f32 %v1713_v40, %v1281_v39  ;;  %v1858_v13 = vadd.f32 %v1714_v52, %v1282_v30  ;;  %v1572_v33 = vmul.f32 1.1111112, %v1428_v23  ;;  %v996_v54 = vmul.u32 2654435761, %v852_v49 }
 0x197   : > { %vm1139_vm14 = vcmp.ge.u32.totalorder %v995_v25, 429496730  ;;  %2000 = vst [vmem:[%s2490_s18 + $0x458] sm:$0xff] %v1856_v20 }
 0x198   : > { %2001 = vst [vmem:[%s2490_s18 + $0x460] sm:$0xff] %v1857_v3  ;;  %v1715_v32 = vsel %vm1139_vm14, %v1571_v44, 0.0  ;;  %2002 = vst [vmem:[%s2490_s18 + $0x468] sm:$0xff] %v1858_v13  ;;  %vm1140_vm15 = vcmp.ge.u32.totalorder %v996_v54, 429496730 }
 0x199   : > { %v1859_v46 = vadd.f32 %v1715_v32, %v1283_v45  ;;  %v1716_v51 = vsel %vm1140_vm15, %v1572_v33, 0.0 }
 0x19a   : > { %v1860_v53 = vadd.f32 %v1716_v51, %v1284_v48 }
 0x19b   : > { %2003 = vst [vmem:[%s2490_s18 + $0x470] sm:$0xff] %v1859_v46 }
 0x19c   : > { %2004 = vst [vmem:[%s2490_s18 + $0x478] sm:$0xff] %v1860_v53 }
 0x19d   : > { %2212 = shalt.err (!%p2209_p1)
}
 0x19e   : > { %s2213_s29 = scalar_lea.hbm %s3432_s28, 18432  ;;  %s2217_s23 = scalar_lea.hbm %s3482_s3, 36864 }
 0x19f   : > { %p2214_p3 = scmp.ne.s32.totalorder %s3432_s28, %s2213_s29  ;;  %p2218_p2 = scmp.lt.s32.totalorder %s3432_s28, %s3482_s3 }
 0x1a0   : > { %p2219_p6 = scmp.lt.s32.totalorder %s2217_s23, %s2213_s29 }
 0x1a1   : > { %p2215_p9 = pnand %p2214_p3, %p3491_p13 }
 0x1a2   : > { %p2220_p11 = por %p2219_p6, %p2218_p2 }
 0x1a3   : > { %p2216_p0 = pneg %p2215_p9 }
 0x1a5   : > { %p2221_p12 = pnand %p2220_p11, %p2216_p0 }
 0x1a7   : > { %2224 = shalt.err (!%p2221_p12)
}
 0x1a8   : > { %s2269_s12 = smov 768   ;;  %s2270_s13 = smov 48  }
 0x1a9   : > { %2121 = dma.vmem_to_hbm [thread:$0]  (%p3491_p13), %s3435_s21, 18432, %s3432_s28, %s2006_s0, %s2269_s12, %s2269_s12, %s2270_s13  }
 0x1aa PF: > { %s2035_s18 = sand.u32 1, %s2251_s14   ;;  %p3492_p4 = scmp.ne.s32.totalorder %s3487_s25, 0 }
 0x1ab   : > { %p3493_p5 = scmp.ge.s32.totalorder %s2263_s17, 2  ;;  %s2036_s20 = scalar_lea.sflag [#allocation6], %s2035_s18 }
 0x1ad   : > { %p2128_p7 = pnand %p3493_p5, %p3492_p4 }
 0x1af   : > { %p2129_p8 = pneg %p2128_p7 }
 0x1b1   : > { %2246 = dma.done.wait (%p2129_p8), %s2036_s20, 18432  }
 0x1b2   : > { %2248 = vsyncadd (%p2129_p8), %s2036_s20, 4294948864  ;;  %p17_p10 = scmp.ge.s32.totalorder %s2319_s19, 4   ;;  %s3494_s14 = smov %s2255_s15 }
 0x1b3   : > { %s3495_s15 = smov %s2259_s16  ;;  %s3496_s16 = smov %s2331_s22 }
 0x1b4   : > { %s3497_s17 = smov %s2319_s19  ;;  %19 = sbr.rel (!%p17_p10) target bundleno = 7 (0x7), region = 76 }
 0x1b9   :  { %2041 = vsyncpa [#allocation5], 1 }
 0x1ba   :  { %2043 = vsyncpa [#allocation5 + $0x1], 1 }
 0x1bb   :  { %2044 = vsyncpa [#allocation6], 1 }
 0x1bc   :  { %2046 = vsyncpa [#allocation6 + $0x1], 1 }

</bundles_post_ra>
